<compile_context>
chip_gen: v7x
topology: tpu7x:2x2x1
jax: 0.10.0
libtpu: 0.0.40
codegen_flags: <defaults>
</compile_context>

<pallas_src>
import functools

import jax
import jax.numpy as jnp
from jax import lax
from jax.experimental import pallas as pl
from jax.experimental.pallas import tpu as pltpu

KSIZE = 4                      # Conv2d kernel size (4, 4)
NTAPS = KSIZE * KSIZE
PAD_LO, PAD_HI = 1, 2          # ZeroPad2d((1, 2, 1, 2))
EPS = 1e-5                     # InstanceNorm2d eps
LEAKY_SLOPE = 0.2              # LeakyReLU(0.2)


def _round_up(x, m):
    return ((x + m - 1) // m) * m


# ---------------------------------------------------------------------------
# Fused Pallas kernel (one grid step == one sample; no scratch buffers)
# ---------------------------------------------------------------------------
def _fused_deconv_kernel(x_ref, u_ref, w1_ref, b1_ref, mask_ref, w2_ref,
                         b2_ref, v_ref, gamma_ref, beta_ref, g_ref,
                         o_ref, mean_ref, *,
                         H, W, use_instance_norm, use_activation,
                         use_global_track):
    """
    x_ref:    (1, C_in, H*W)        NCHW-flat input (no wrapper transpose)
    u_ref:    (H*W, F)              hoisted upsample+pad 0/1 selection matrix
    w1_ref:   (C_out, 16*C_in) bf16 conv1 weight, cols ordered (ky, kx, ci)
    b1_ref:   (C_out, 1)
    mask_ref: (1, F)                1 on valid conv-output columns of the
                                    flat (Hp, Wp) grid, 0 elsewhere
    w2_ref:   (C_out, 16*C_out) bf16
    b2/gamma/beta_ref: (C_out, 1)
    v_ref:    (F, 2H*2W)            hoisted compaction 0/1 selection matrix
    g_ref:    (1, C_out, 1)         precomputed global-track merge vector
    o_ref:    (1, C_out, 2H*2W)     lane-dense NCHW-flat output
    mean_ref: (1, C_out, 1)         pre-norm per-channel spatial mean
    """
    H1, W1 = 2 * H, 2 * W
    Hp = H1 + PAD_LO + PAD_HI
    Wp = W1 + PAD_LO + PAD_HI
    F = _round_up(Hp * Wp, 128)            # flat width, multiple of 128 lanes

    def tap_patch(src_f32):
        # K = 16*C im2col patch, rows ordered (ky, kx, ci).  Each tap is a
        # static lane rotation (XLU) of the flat (Hp, Wp)-grid image by
        # ky*Wp + kx; the concat blocks are 8-row (f32 sublane tile) aligned.
        # Wrapped-around lanes only ever land in columns that are masked
        # (conv1) or dropped by the V compaction (conv2).
        blocks = []
        for ky in range(KSIZE):
            for kx in range(KSIZE):
                s = ky * Wp + kx
                blk = src_f32 if s == 0 else pltpu.roll(
                    src_f32, shift=F - s, axis=1)
                blocks.append(blk.astype(jnp.bfloat16))   # bf16 MXU feed
        return jnp.concatenate(blocks, axis=0)            # (16*C, F) bf16

    x = x_ref[0].astype(jnp.float32)                       # (C_in, H*W)
    if use_activation:
        # LeakyReLU before upsample, matching the PyTorch op order.
        x = jnp.where(x >= 0, x, LEAKY_SLOPE * x)

    # Nearest-2x upsample + ZeroPad2d((1,2,1,2)): one tiny selection matmul
    # with the hoisted constant U (exact 0/1 copies).
    xp = jnp.dot(x, u_ref[...], preferred_element_type=jnp.float32)  # (C_in, F)

    # --- conv1: single K=16*C_in matmul on an in-register bf16 patch --------
    p1 = tap_patch(xp)
    y1 = jnp.dot(w1_ref[...], p1,
                 preferred_element_type=jnp.float32) + b1_ref[...]   # (C_out, F)

    # --- inter-conv ZeroPad2d((1,2,1,2)), fully in-register ------------------
    # Zero the invalid flat-grid columns, then lane-rotate by PAD_LO*(Wp+1):
    # valid outputs move to the padded-grid interior, every pad position
    # receives a zero (masked or tail column rolled in).
    y1 = pltpu.roll(y1 * mask_ref[...], shift=PAD_LO * Wp + PAD_LO, axis=1)

    # --- conv2, same formulation ---------------------------------------------
    p2 = tap_patch(y1)
    y2f = jnp.dot(w2_ref[...], p2,
                  preferred_element_type=jnp.float32) + b2_ref[...]  # (C_out, F)

    # Compact the H1*W1 valid columns out of the (Hp, Wp) grid with the hoisted
    # 0/1 matrix V -> lane-dense NCHW-flat output (exact copies in f32).
    y2 = jnp.dot(y2f, v_ref[...],
                 preferred_element_type=jnp.float32)       # (C_out, H1*W1)

    # --- channel mean (pre-norm), InstanceNorm (two-pass), merge -------------
    inv_n = 1.0 / float(H1 * W1)
    mu = jnp.sum(y2, axis=1, keepdims=True) * inv_n         # (C_out, 1)
    mean_ref[0] = mu.astype(mean_ref.dtype)
    if use_instance_norm:
        d = y2 - mu
        var = jnp.sum(d * d, axis=1, keepdims=True) * inv_n  # biased variance
        y2 = d * (lax.rsqrt(var + EPS) * gamma_ref[...]) + beta_ref[...]
    if use_global_track:
        y2 = y2 + g_ref[0]                                   # broadcast over H*W
    o_ref[0] = y2.astype(o_ref.dtype)


# ---------------------------------------------------------------------------
# Hoisted selection constants (built once in the wrapper, review item 3)
# ---------------------------------------------------------------------------
def _build_selection_constants(H, W):
    H1, W1 = 2 * H, 2 * W
    Hp, Wp = H1 + PAD_LO + PAD_HI, W1 + PAD_LO + PAD_HI
    F = _round_up(Hp * Wp, 128)

    col = jnp.arange(F)
    r, s = col // Wp, col % Wp

    # U[i*W+j, col] = 1 iff col is one of the 4 flat padded-grid positions that
    # nearest-2x upsample + ZeroPad2d((1,2,1,2)) copies x[:, i, j] to.
    hw = jnp.arange(H * W)
    ii, jj = hw // W, hw % W
    row_hit = ((r[None, :] == (2 * ii + PAD_LO)[:, None]) |
               (r[None, :] == (2 * ii + PAD_LO + 1)[:, None]))
    col_hit = ((s[None, :] == (2 * jj + PAD_LO)[:, None]) |
               (s[None, :] == (2 * jj + PAD_LO + 1)[:, None]))
    U = (row_hit & col_hit & (col[None, :] < Hp * Wp)).astype(jnp.float32)

    # mask[col] = 1 iff col holds a valid 4x4-conv output on the (Hp, Wp) grid.
    mask = ((col < Hp * Wp) & (r < H1) & (s < W1)
            ).astype(jnp.float32)[None, :]                    # (1, F)

    # V[col, p*W1+q] = 1 iff col == p*Wp + q: compacts valid conv2 outputs
    # into the dense row-major (H1*W1) layout (== NCHW-flat).
    m = jnp.arange(H1 * W1)
    p, q = m // W1, m % W1
    V = (col[:, None] == (p * Wp + q)[None, :]).astype(jnp.float32)  # (F, H1*W1)
    return U, mask, V


# ---------------------------------------------------------------------------
# pallas_call wrapper
# ---------------------------------------------------------------------------
def _fused_deconv_pallas(x_flat, U, w1t, b1, mask, w2t, b2, V, gamma, beta, g,
                         H, W, use_instance_norm, use_activation,
                         use_global_track):
    N, C_in, _ = x_flat.shape
    C_out = w1t.shape[0]
    H1, W1 = 2 * H, 2 * W

    kern = functools.partial(
        _fused_deconv_kernel, H=H, W=W,
        use_instance_norm=use_instance_norm, use_activation=use_activation,
        use_global_track=use_global_track)

    out_flat, mean = pl.pallas_call(
        kern,
        out_shape=(jax.ShapeDtypeStruct((N, C_out, H1 * W1), jnp.float32),
                   jax.ShapeDtypeStruct((N, C_out, 1), jnp.float32)),
        grid_spec=pltpu.PrefetchScalarGridSpec(
            num_scalar_prefetch=0, grid=(N,),
            in_specs=[
                pl.BlockSpec((1, C_in, H * W), lambda n: (n, 0, 0)),
                pl.BlockSpec(U.shape, lambda n: (0, 0)),      # constant, resident
                pl.BlockSpec(w1t.shape, lambda n: (0, 0)),
                pl.BlockSpec(b1.shape, lambda n: (0, 0)),
                pl.BlockSpec(mask.shape, lambda n: (0, 0)),
                pl.BlockSpec(w2t.shape, lambda n: (0, 0)),
                pl.BlockSpec(b2.shape, lambda n: (0, 0)),
                pl.BlockSpec(V.shape, lambda n: (0, 0)),
                pl.BlockSpec(gamma.shape, lambda n: (0, 0)),
                pl.BlockSpec(beta.shape, lambda n: (0, 0)),
                pl.BlockSpec((1, C_out, 1), lambda n: (n, 0, 0)),
            ],
            out_specs=[
                pl.BlockSpec((1, C_out, H1 * W1), lambda n: (n, 0, 0)),
                pl.BlockSpec((1, C_out, 1), lambda n: (n, 0, 0)),
            ]),
        compiler_params=pltpu.CompilerParams(
            dimension_semantics=("parallel",)),
    )(x_flat, U, w1t, b1, mask, w2t, b2, V, gamma, beta, g)
    return out_flat, mean


# ---------------------------------------------------------------------------
# Parameters & public forward (NCHW in / NCHW out, like PyTorch)
# ---------------------------------------------------------------------------
def init_params(key, input_channels, output_channels):
    ks = jax.random.split(key, 8)
    return {
        # conv weights stored as HWIO: (kH, kW, C_in, C_out)
        "w1": jax.random.normal(ks[0], (KSIZE, KSIZE, input_channels,
                                        output_channels), jnp.float32) * 0.05,
        "b1": jax.random.normal(ks[1], (output_channels,), jnp.float32) * 0.01,
        "w2": jax.random.normal(ks[2], (KSIZE, KSIZE, output_channels,
                                        output_channels), jnp.float32) * 0.05,
        "b2": jax.random.normal(ks[3], (output_channels,), jnp.float32) * 0.01,
        "gamma": 1.0 + 0.1 * jax.random.normal(ks[4], (output_channels,),
                                               jnp.float32),
        "beta": 0.1 * jax.random.normal(ks[5], (output_channels,), jnp.float32),
        # MergeLayer Linear(C, C): stored as (in, out)
        "w_fc": jax.random.normal(ks[6], (output_channels, output_channels),
                                  jnp.float32) * 0.1,
        "b_fc": jax.random.normal(ks[7], (output_channels,), jnp.float32) * 0.01,
    }


def decoding_layer_forward(params, x_nchw, skip_nchw, global_track,
                           use_instance_norm=True, use_activation=True,
                           use_dropout=False):
    """Matches DecodingLayer.forward.  Inputs/outputs are NCHW like PyTorch."""
    if skip_nchw is not None:
        x_nchw = jnp.concatenate([x_nchw, skip_nchw], axis=1)
    N, C_in, H, W = x_nchw.shape
    C_out = params["w1"].shape[-1]
    H1, W1 = 2 * H, 2 * W

    U, mask, V = _build_selection_constants(H, W)

    # Kernel works directly in the NCHW(-flat) layout: no transpose either way.
    x_flat = x_nchw.reshape(N, C_in, H * W).astype(jnp.float32)

    # Conv weights as (C_out, 16*C) bf16 (columns ordered ky, kx, ci).
    w1t = params["w1"].reshape(NTAPS * C_in, C_out).T.astype(jnp.bfloat16)
    w2t = params["w2"].reshape(NTAPS * C_out, C_out).T.astype(jnp.bfloat16)
    b1 = params["b1"].reshape(C_out, 1).astype(jnp.float32)
    b2 = params["b2"].reshape(C_out, 1).astype(jnp.float32)
    gamma = params["gamma"].reshape(C_out, 1).astype(jnp.float32)
    beta = params["beta"].reshape(C_out, 1).astype(jnp.float32)

    use_gt = global_track is not None
    if use_gt:
        # MergeLayer Linear precomputed here (tiny matmul, keeps W_fc out of
        # the kernel's VMEM and off the per-step MXU path).
        g = global_track.astype(jnp.float32) @ params["w_fc"] + params["b_fc"]
    else:
        g = jnp.zeros((N, C_out), jnp.float32)
    g = g[:, :, None]                                          # (N, C_out, 1)

    out_flat, mean = _fused_deconv_pallas(
        x_flat, U, w1t, b1, mask, w2t, b2, V, gamma, beta, g,
        H, W, use_instance_norm, use_activation, use_gt)

    # (N, C, H1*W1) -> (N, C, H1, W1): free row-major reshape (already NCHW).
    out = out_flat.reshape(N, C_out, H1, W1)
    # TODO(synk): nn.Dropout(0.5) training-mode masking not implemented;
    # inference (identity) semantics are used.
    del use_dropout
    return out, mean[:, :, 0]


# ---------------------------------------------------------------------------
# Pure-JAX reference (f32 throughout, for correctness check)
# ---------------------------------------------------------------------------
def _ref_forward(params, x_nchw, skip_nchw, global_track,
                 use_instance_norm=True, use_activation=True):
    if skip_nchw is not None:
        x_nchw = jnp.concatenate([x_nchw, skip_nchw], axis=1)
    x = jnp.transpose(x_nchw, (0, 2, 3, 1)).astype(jnp.float32)
    if use_activation:
        x = jnp.where(x >= 0, x, LEAKY_SLOPE * x)
    x = jnp.repeat(jnp.repeat(x, 2, axis=1), 2, axis=2)
    x = jnp.pad(x, ((0, 0), (PAD_LO, PAD_HI), (PAD_LO, PAD_HI), (0, 0)))
    dn = ("NHWC", "HWIO", "NHWC")
    y = lax.conv_general_dilated(x, params["w1"], (1, 1), "VALID",
                                 dimension_numbers=dn) + params["b1"]
    y = jnp.pad(y, ((0, 0), (PAD_LO, PAD_HI), (PAD_LO, PAD_HI), (0, 0)))
    y = lax.conv_general_dilated(y, params["w2"], (1, 1), "VALID",
                                 dimension_numbers=dn) + params["b2"]
    mean = jnp.mean(y, axis=(1, 2))
    if use_instance_norm:
        mu = jnp.mean(y, axis=(1, 2), keepdims=True)
        var = jnp.mean((y - mu) ** 2, axis=(1, 2), keepdims=True)
        y = (y - mu) * lax.rsqrt(var + EPS) * params["gamma"] + params["beta"]
    if global_track is not None:
        g = global_track.astype(jnp.float32) @ params["w_fc"] + params["b_fc"]
        y = y + g[:, None, None, :]
    return jnp.transpose(y, (0, 3, 1, 2)), mean


# ---------------------------------------------------------------------------
if __name__ == "__main__":
    key = jax.random.PRNGKey(0)
    k_x, k_skip, k_gt, k_p = jax.random.split(key, 4)

    # batch=2, x channels=4, skip channels=4 -> input_channels=8,
    # output_channels=8, spatial 8x8 (layer upsamples to 16x16).
    N, CX, CS, H, W = 2, 4, 4, 8, 8
    C_IN, C_OUT = CX + CS, 8

    x = jax.random.normal(k_x, (N, CX, H, W), jnp.float32)
    skip = jax.random.normal(k_skip, (N, CS, H, W), jnp.float32)
    gt = jax.random.normal(k_gt, (N, C_OUT), jnp.float32)

    params = init_params(k_p, C_IN, C_OUT)

    out, mean = decoding_layer_forward(params, x, skip, gt,
                                       use_instance_norm=True,
                                       use_activation=True,
                                       use_dropout=False)
    out = jax.block_until_ready(out)
    mean = jax.block_until_ready(mean)

    ref_out, ref_mean = _ref_forward(params, x, skip, gt)
    assert out.shape == (N, C_OUT, 2 * H, 2 * W), out.shape
    assert mean.shape == (N, C_OUT), mean.shape
    # Kernel feeds the MXU bf16 (per perf review); compare against the f32
    # reference with a bf16-appropriate tolerance.
    assert jnp.allclose(out, ref_out, atol=5e-2, rtol=5e-2), (
        float(jnp.max(jnp.abs(out - ref_out))))
    assert jnp.allclose(mean, ref_mean, atol=1e-2, rtol=5e-2), (
        float(jnp.max(jnp.abs(mean - ref_mean))))

    print("KERNEL_OK")
</pallas_src>

<mosaic_0001>
module attributes {stable_mosaic.version = 11 : i64} {
  func.func @_fused_deconv_kernel(%arg0: i32, %arg1: memref<1x8x64xf32, #tpu.memory_space<vmem>>, %arg2: memref<64x384xf32, #tpu.memory_space<vmem>>, %arg3: memref<8x128xbf16, #tpu.memory_space<vmem>>, %arg4: memref<8x1xf32, #tpu.memory_space<vmem>>, %arg5: memref<1x384xf32, #tpu.memory_space<vmem>>, %arg6: memref<8x128xbf16, #tpu.memory_space<vmem>>, %arg7: memref<8x1xf32, #tpu.memory_space<vmem>>, %arg8: memref<384x256xf32, #tpu.memory_space<vmem>>, %arg9: memref<8x1xf32, #tpu.memory_space<vmem>>, %arg10: memref<8x1xf32, #tpu.memory_space<vmem>>, %arg11: memref<1x8x1xf32, #tpu.memory_space<vmem>>, %arg12: memref<1x8x256xf32, #tpu.memory_space<vmem>>, %arg13: memref<1x8x1xf32, #tpu.memory_space<vmem>>) attributes {dimension_semantics = [#tpu.dimension_semantics<parallel>], iteration_bounds = array<i64: 2>, scalar_prefetch = 0 : i64, scratch_operands = 0 : i64, tpu.core_type = #tpu.core_type<tc>, window_params = [{transform_indices = @transform_0, window_bounds = array<i64: 1, 8, 64>}, {pipeline_mode = #tpu.pipeline_mode<synchronous>, transform_indices = @transform_1, window_bounds = array<i64: 64, 384>}, {pipeline_mode = #tpu.pipeline_mode<synchronous>, transform_indices = @transform_2, window_bounds = array<i64: 8, 128>}, {pipeline_mode = #tpu.pipeline_mode<synchronous>, transform_indices = @transform_3, window_bounds = array<i64: 8, 1>}, {pipeline_mode = #tpu.pipeline_mode<synchronous>, transform_indices = @transform_4, window_bounds = array<i64: 1, 384>}, {pipeline_mode = #tpu.pipeline_mode<synchronous>, transform_indices = @transform_5, window_bounds = array<i64: 8, 128>}, {pipeline_mode = #tpu.pipeline_mode<synchronous>, transform_indices = @transform_6, window_bounds = array<i64: 8, 1>}, {pipeline_mode = #tpu.pipeline_mode<synchronous>, transform_indices = @transform_7, window_bounds = array<i64: 384, 256>}, {pipeline_mode = #tpu.pipeline_mode<synchronous>, transform_indices = @transform_8, window_bounds = array<i64: 8, 1>}, {pipeline_mode = #tpu.pipeline_mode<synchronous>, transform_indices = @transform_9, window_bounds = array<i64: 8, 1>}, {transform_indices = @transform_10, window_bounds = array<i64: 1, 8, 1>}, {transform_indices = @transform_11, window_bounds = array<i64: 1, 8, 256>}, {transform_indices = @transform_12, window_bounds = array<i64: 1, 8, 1>}]} {
    %c0 = arith.constant 0 : index
    %c0_0 = arith.constant 0 : index
    %c0_1 = arith.constant 0 : index
    %0 = vector.load %arg1[%c0, %c0_0, %c0_1] : memref<1x8x64xf32, #tpu.memory_space<vmem>>, vector<1x8x64xf32>
    %1 = vector.shape_cast %0 : vector<1x8x64xf32> to vector<8x64xf32>
    %cst = arith.constant 0.000000e+00 : f32
    %2 = vector.broadcast %cst : f32 to vector<8x64xf32>
    %3 = arith.cmpf oge, %1, %2 : vector<8x64xf32>
    %cst_2 = arith.constant 2.000000e-01 : f32
    %4 = vector.broadcast %cst_2 : f32 to vector<8x64xf32>
    %5 = arith.mulf %4, %1 : vector<8x64xf32>
    %6 = arith.select %3, %1, %5 : vector<8x64xi1>, vector<8x64xf32>
    %c0_3 = arith.constant 0 : index
    %c0_4 = arith.constant 0 : index
    %7 = vector.load %arg2[%c0_3, %c0_4] : memref<64x384xf32, #tpu.memory_space<vmem>>, vector<64x384xf32>
    %cst_5 = arith.constant dense<0.000000e+00> : vector<8x384xf32>
    %8 = tpu.matmul %6, %7, %cst_5 {dimension_numbers = #tpu.dot_dimension_numbers<[1], [0], [0], [1], [0, 0, 1, 1], [], []>} : vector<8x64xf32>, vector<64x384xf32>, vector<8x384xf32> -> vector<8x384xf32>
    %9 = arith.truncf %8 : vector<8x384xf32> to vector<8x384xbf16>
    %c383_i32 = arith.constant 383 : i32
    %10 = tpu.dynamic_rotate %8 by %c383_i32 dim 1 : vector<8x384xf32>, i32 -> vector<8x384xf32>
    %11 = arith.truncf %10 : vector<8x384xf32> to vector<8x384xbf16>
    %c382_i32 = arith.constant 382 : i32
    %12 = tpu.dynamic_rotate %8 by %c382_i32 dim 1 : vector<8x384xf32>, i32 -> vector<8x384xf32>
    %13 = arith.truncf %12 : vector<8x384xf32> to vector<8x384xbf16>
    %c381_i32 = arith.constant 381 : i32
    %14 = tpu.dynamic_rotate %8 by %c381_i32 dim 1 : vector<8x384xf32>, i32 -> vector<8x384xf32>
    %15 = arith.truncf %14 : vector<8x384xf32> to vector<8x384xbf16>
    %c365_i32 = arith.constant 365 : i32
    %16 = tpu.dynamic_rotate %8 by %c365_i32 dim 1 : vector<8x384xf32>, i32 -> vector<8x384xf32>
    %17 = arith.truncf %16 : vector<8x384xf32> to vector<8x384xbf16>
    %c364_i32 = arith.constant 364 : i32
    %18 = tpu.dynamic_rotate %8 by %c364_i32 dim 1 : vector<8x384xf32>, i32 -> vector<8x384xf32>
    %19 = arith.truncf %18 : vector<8x384xf32> to vector<8x384xbf16>
    %c363_i32 = arith.constant 363 : i32
    %20 = tpu.dynamic_rotate %8 by %c363_i32 dim 1 : vector<8x384xf32>, i32 -> vector<8x384xf32>
    %21 = arith.truncf %20 : vector<8x384xf32> to vector<8x384xbf16>
    %c362_i32 = arith.constant 362 : i32
    %22 = tpu.dynamic_rotate %8 by %c362_i32 dim 1 : vector<8x384xf32>, i32 -> vector<8x384xf32>
    %23 = arith.truncf %22 : vector<8x384xf32> to vector<8x384xbf16>
    %c346_i32 = arith.constant 346 : i32
    %24 = tpu.dynamic_rotate %8 by %c346_i32 dim 1 : vector<8x384xf32>, i32 -> vector<8x384xf32>
    %25 = arith.truncf %24 : vector<8x384xf32> to vector<8x384xbf16>
    %c345_i32 = arith.constant 345 : i32
    %26 = tpu.dynamic_rotate %8 by %c345_i32 dim 1 : vector<8x384xf32>, i32 -> vector<8x384xf32>
    %27 = arith.truncf %26 : vector<8x384xf32> to vector<8x384xbf16>
    %c344_i32 = arith.constant 344 : i32
    %28 = tpu.dynamic_rotate %8 by %c344_i32 dim 1 : vector<8x384xf32>, i32 -> vector<8x384xf32>
    %29 = arith.truncf %28 : vector<8x384xf32> to vector<8x384xbf16>
    %c343_i32 = arith.constant 343 : i32
    %30 = tpu.dynamic_rotate %8 by %c343_i32 dim 1 : vector<8x384xf32>, i32 -> vector<8x384xf32>
    %31 = arith.truncf %30 : vector<8x384xf32> to vector<8x384xbf16>
    %c327_i32 = arith.constant 327 : i32
    %32 = tpu.dynamic_rotate %8 by %c327_i32 dim 1 : vector<8x384xf32>, i32 -> vector<8x384xf32>
    %33 = arith.truncf %32 : vector<8x384xf32> to vector<8x384xbf16>
    %c326_i32 = arith.constant 326 : i32
    %34 = tpu.dynamic_rotate %8 by %c326_i32 dim 1 : vector<8x384xf32>, i32 -> vector<8x384xf32>
    %35 = arith.truncf %34 : vector<8x384xf32> to vector<8x384xbf16>
    %c325_i32 = arith.constant 325 : i32
    %36 = tpu.dynamic_rotate %8 by %c325_i32 dim 1 : vector<8x384xf32>, i32 -> vector<8x384xf32>
    %37 = arith.truncf %36 : vector<8x384xf32> to vector<8x384xbf16>
    %c324_i32 = arith.constant 324 : i32
    %38 = tpu.dynamic_rotate %8 by %c324_i32 dim 1 : vector<8x384xf32>, i32 -> vector<8x384xf32>
    %39 = arith.truncf %38 : vector<8x384xf32> to vector<8x384xbf16>
    %40 = tpu.concatenate %9, %11, %13, %15, %17, %19, %21, %23, %25, %27, %29, %31, %33, %35, %37, %39 in 0 : vector<8x384xbf16>, vector<8x384xbf16>, vector<8x384xbf16>, vector<8x384xbf16>, vector<8x384xbf16>, vector<8x384xbf16>, vector<8x384xbf16>, vector<8x384xbf16>, vector<8x384xbf16>, vector<8x384xbf16>, vector<8x384xbf16>, vector<8x384xbf16>, vector<8x384xbf16>, vector<8x384xbf16>, vector<8x384xbf16>, vector<8x384xbf16> -> vector<128x384xbf16>
    %c0_6 = arith.constant 0 : index
    %c0_7 = arith.constant 0 : index
    %41 = vector.load %arg3[%c0_6, %c0_7] : memref<8x128xbf16, #tpu.memory_space<vmem>>, vector<8x128xbf16>
    %cst_8 = arith.constant dense<0.000000e+00> : vector<8x384xf32>
    %42 = tpu.matmul %41, %40, %cst_8 {dimension_numbers = #tpu.dot_dimension_numbers<[1], [0], [0], [1], [0, 0, 1, 1], [], []>} : vector<8x128xbf16>, vector<128x384xbf16>, vector<8x384xf32> -> vector<8x384xf32>
    %c0_9 = arith.constant 0 : index
    %c0_10 = arith.constant 0 : index
    %43 = vector.load %arg4[%c0_9, %c0_10] : memref<8x1xf32, #tpu.memory_space<vmem>>, vector<8x1xf32>
    %44 = vector.broadcast %43 : vector<8x1xf32> to vector<8x384xf32>
    %45 = arith.addf %42, %44 : vector<8x384xf32>
    %c0_11 = arith.constant 0 : index
    %c0_12 = arith.constant 0 : index
    %46 = vector.load %arg5[%c0_11, %c0_12] : memref<1x384xf32, #tpu.memory_space<vmem>>, vector<1x384xf32>
    %47 = vector.broadcast %46 : vector<1x384xf32> to vector<8x384xf32>
    %48 = arith.mulf %45, %47 : vector<8x384xf32>
    %c20_i32 = arith.constant 20 : i32
    %49 = tpu.dynamic_rotate %48 by %c20_i32 dim 1 : vector<8x384xf32>, i32 -> vector<8x384xf32>
    %50 = arith.truncf %49 : vector<8x384xf32> to vector<8x384xbf16>
    %c383_i32_13 = arith.constant 383 : i32
    %51 = tpu.dynamic_rotate %49 by %c383_i32_13 dim 1 : vector<8x384xf32>, i32 -> vector<8x384xf32>
    %52 = arith.truncf %51 : vector<8x384xf32> to vector<8x384xbf16>
    %c382_i32_14 = arith.constant 382 : i32
    %53 = tpu.dynamic_rotate %49 by %c382_i32_14 dim 1 : vector<8x384xf32>, i32 -> vector<8x384xf32>
    %54 = arith.truncf %53 : vector<8x384xf32> to vector<8x384xbf16>
    %c381_i32_15 = arith.constant 381 : i32
    %55 = tpu.dynamic_rotate %49 by %c381_i32_15 dim 1 : vector<8x384xf32>, i32 -> vector<8x384xf32>
    %56 = arith.truncf %55 : vector<8x384xf32> to vector<8x384xbf16>
    %c365_i32_16 = arith.constant 365 : i32
    %57 = tpu.dynamic_rotate %49 by %c365_i32_16 dim 1 : vector<8x384xf32>, i32 -> vector<8x384xf32>
    %58 = arith.truncf %57 : vector<8x384xf32> to vector<8x384xbf16>
    %c364_i32_17 = arith.constant 364 : i32
    %59 = tpu.dynamic_rotate %49 by %c364_i32_17 dim 1 : vector<8x384xf32>, i32 -> vector<8x384xf32>
    %60 = arith.truncf %59 : vector<8x384xf32> to vector<8x384xbf16>
    %c363_i32_18 = arith.constant 363 : i32
    %61 = tpu.dynamic_rotate %49 by %c363_i32_18 dim 1 : vector<8x384xf32>, i32 -> vector<8x384xf32>
    %62 = arith.truncf %61 : vector<8x384xf32> to vector<8x384xbf16>
    %c362_i32_19 = arith.constant 362 : i32
    %63 = tpu.dynamic_rotate %49 by %c362_i32_19 dim 1 : vector<8x384xf32>, i32 -> vector<8x384xf32>
    %64 = arith.truncf %63 : vector<8x384xf32> to vector<8x384xbf16>
    %c346_i32_20 = arith.constant 346 : i32
    %65 = tpu.dynamic_rotate %49 by %c346_i32_20 dim 1 : vector<8x384xf32>, i32 -> vector<8x384xf32>
    %66 = arith.truncf %65 : vector<8x384xf32> to vector<8x384xbf16>
    %c345_i32_21 = arith.constant 345 : i32
    %67 = tpu.dynamic_rotate %49 by %c345_i32_21 dim 1 : vector<8x384xf32>, i32 -> vector<8x384xf32>
    %68 = arith.truncf %67 : vector<8x384xf32> to vector<8x384xbf16>
    %c344_i32_22 = arith.constant 344 : i32
    %69 = tpu.dynamic_rotate %49 by %c344_i32_22 dim 1 : vector<8x384xf32>, i32 -> vector<8x384xf32>
    %70 = arith.truncf %69 : vector<8x384xf32> to vector<8x384xbf16>
    %c343_i32_23 = arith.constant 343 : i32
    %71 = tpu.dynamic_rotate %49 by %c343_i32_23 dim 1 : vector<8x384xf32>, i32 -> vector<8x384xf32>
    %72 = arith.truncf %71 : vector<8x384xf32> to vector<8x384xbf16>
    %c327_i32_24 = arith.constant 327 : i32
    %73 = tpu.dynamic_rotate %49 by %c327_i32_24 dim 1 : vector<8x384xf32>, i32 -> vector<8x384xf32>
    %74 = arith.truncf %73 : vector<8x384xf32> to vector<8x384xbf16>
    %c326_i32_25 = arith.constant 326 : i32
    %75 = tpu.dynamic_rotate %49 by %c326_i32_25 dim 1 : vector<8x384xf32>, i32 -> vector<8x384xf32>
    %76 = arith.truncf %75 : vector<8x384xf32> to vector<8x384xbf16>
    %c325_i32_26 = arith.constant 325 : i32
    %77 = tpu.dynamic_rotate %49 by %c325_i32_26 dim 1 : vector<8x384xf32>, i32 -> vector<8x384xf32>
    %78 = arith.truncf %77 : vector<8x384xf32> to vector<8x384xbf16>
    %c324_i32_27 = arith.constant 324 : i32
    %79 = tpu.dynamic_rotate %49 by %c324_i32_27 dim 1 : vector<8x384xf32>, i32 -> vector<8x384xf32>
    %80 = arith.truncf %79 : vector<8x384xf32> to vector<8x384xbf16>
    %81 = tpu.concatenate %50, %52, %54, %56, %58, %60, %62, %64, %66, %68, %70, %72, %74, %76, %78, %80 in 0 : vector<8x384xbf16>, vector<8x384xbf16>, vector<8x384xbf16>, vector<8x384xbf16>, vector<8x384xbf16>, vector<8x384xbf16>, vector<8x384xbf16>, vector<8x384xbf16>, vector<8x384xbf16>, vector<8x384xbf16>, vector<8x384xbf16>, vector<8x384xbf16>, vector<8x384xbf16>, vector<8x384xbf16>, vector<8x384xbf16>, vector<8x384xbf16> -> vector<128x384xbf16>
    %c0_28 = arith.constant 0 : index
    %c0_29 = arith.constant 0 : index
    %82 = vector.load %arg6[%c0_28, %c0_29] : memref<8x128xbf16, #tpu.memory_space<vmem>>, vector<8x128xbf16>
    %cst_30 = arith.constant dense<0.000000e+00> : vector<8x384xf32>
    %83 = tpu.matmul %82, %81, %cst_30 {dimension_numbers = #tpu.dot_dimension_numbers<[1], [0], [0], [1], [0, 0, 1, 1], [], []>} : vector<8x128xbf16>, vector<128x384xbf16>, vector<8x384xf32> -> vector<8x384xf32>
    %c0_31 = arith.constant 0 : index
    %c0_32 = arith.constant 0 : index
    %84 = vector.load %arg7[%c0_31, %c0_32] : memref<8x1xf32, #tpu.memory_space<vmem>>, vector<8x1xf32>
    %85 = vector.broadcast %84 : vector<8x1xf32> to vector<8x384xf32>
    %86 = arith.addf %83, %85 : vector<8x384xf32>
    %c0_33 = arith.constant 0 : index
    %c0_34 = arith.constant 0 : index
    %87 = vector.load %arg8[%c0_33, %c0_34] : memref<384x256xf32, #tpu.memory_space<vmem>>, vector<384x256xf32>
    %cst_35 = arith.constant dense<0.000000e+00> : vector<8x256xf32>
    %88 = tpu.matmul %86, %87, %cst_35 {dimension_numbers = #tpu.dot_dimension_numbers<[1], [0], [0], [1], [0, 0, 1, 1], [], []>} : vector<8x384xf32>, vector<384x256xf32>, vector<8x256xf32> -> vector<8x256xf32>
    %cst_36 = arith.constant dense<0.000000e+00> : vector<8xf32>
    %89 = vector.multi_reduction <add>, %88, %cst_36 [1] : vector<8x256xf32> to vector<8xf32>
    %90 = vector.shape_cast %89 : vector<8xf32> to vector<8x1xf32>
    %cst_37 = arith.constant 3.906250e-03 : f32
    %91 = vector.broadcast %cst_37 : f32 to vector<8x1xf32>
    %92 = arith.mulf %90, %91 : vector<8x1xf32>
    %c0_38 = arith.constant 0 : index
    %c0_39 = arith.constant 0 : index
    %c0_40 = arith.constant 0 : index
    %93 = vector.load %arg13[%c0_38, %c0_39, %c0_40] : memref<1x8x1xf32, #tpu.memory_space<vmem>>, vector<1x8x1xf32>
    %94 = vector.shape_cast %93 : vector<1x8x1xf32> to vector<8x1xf32>
    %95 = vector.shape_cast %92 : vector<8x1xf32> to vector<1x8x1xf32>
    tpu.vector_store %arg13[%c0_38, %c0_39, %c0_40], %95 {strides = array<i32>} : memref<1x8x1xf32, #tpu.memory_space<vmem>>, vector<1x8x1xf32>,
    %96 = vector.broadcast %92 : vector<8x1xf32> to vector<8x256xf32>
    %97 = arith.subf %88, %96 : vector<8x256xf32>
    %98 = arith.mulf %97, %97 : vector<8x256xf32>
    %cst_41 = arith.constant dense<0.000000e+00> : vector<8xf32>
    %99 = vector.multi_reduction <add>, %98, %cst_41 [1] : vector<8x256xf32> to vector<8xf32>
    %100 = vector.shape_cast %99 : vector<8xf32> to vector<8x1xf32>
    %cst_42 = arith.constant 3.906250e-03 : f32
    %101 = vector.broadcast %cst_42 : f32 to vector<8x1xf32>
    %102 = arith.mulf %100, %101 : vector<8x1xf32>
    %cst_43 = arith.constant 9.99999974E-6 : f32
    %103 = vector.broadcast %cst_43 : f32 to vector<8x1xf32>
    %104 = arith.addf %102, %103 : vector<8x1xf32>
    %105 = math.rsqrt %104 : vector<8x1xf32>
    %c0_44 = arith.constant 0 : index
    %c0_45 = arith.constant 0 : index
    %106 = vector.load %arg9[%c0_44, %c0_45] : memref<8x1xf32, #tpu.memory_space<vmem>>, vector<8x1xf32>
    %107 = arith.mulf %105, %106 : vector<8x1xf32>
    %108 = vector.broadcast %107 : vector<8x1xf32> to vector<8x256xf32>
    %109 = arith.mulf %97, %108 : vector<8x256xf32>
    %c0_46 = arith.constant 0 : index
    %c0_47 = arith.constant 0 : index
    %110 = vector.load %arg10[%c0_46, %c0_47] : memref<8x1xf32, #tpu.memory_space<vmem>>, vector<8x1xf32>
    %111 = vector.broadcast %110 : vector<8x1xf32> to vector<8x256xf32>
    %112 = arith.addf %109, %111 : vector<8x256xf32>
    %c0_48 = arith.constant 0 : index
    %c0_49 = arith.constant 0 : index
    %c0_50 = arith.constant 0 : index
    %113 = vector.load %arg11[%c0_48, %c0_49, %c0_50] : memref<1x8x1xf32, #tpu.memory_space<vmem>>, vector<1x8x1xf32>
    %114 = vector.shape_cast %113 : vector<1x8x1xf32> to vector<8x1xf32>
    %115 = vector.broadcast %114 : vector<8x1xf32> to vector<8x256xf32>
    %116 = arith.addf %112, %115 : vector<8x256xf32>
    %c0_51 = arith.constant 0 : index
    %c0_52 = arith.constant 0 : index
    %c0_53 = arith.constant 0 : index
    %117 = vector.load %arg12[%c0_51, %c0_52, %c0_53] : memref<1x8x256xf32, #tpu.memory_space<vmem>>, vector<1x8x256xf32>
    %118 = vector.shape_cast %117 : vector<1x8x256xf32> to vector<8x256xf32>
    %119 = vector.shape_cast %116 : vector<8x256xf32> to vector<1x8x256xf32>
    tpu.vector_store %arg12[%c0_51, %c0_52, %c0_53], %119 {strides = array<i32>} : memref<1x8x256xf32, #tpu.memory_space<vmem>>, vector<1x8x256xf32>,
    return
  }
  func.func @transform_0(%arg0: i32) -> (i32, i32, i32) {
    %c0_i32 = arith.constant 0 : i32
    %c0_i32_0 = arith.constant 0 : i32
    %c0_i32_1 = arith.constant 0 : i32
    return %arg0, %c0_i32, %c0_i32_0 : i32, i32, i32
  }
  func.func @transform_1(%arg0: i32) -> (i32, i32) {
    %c0_i32 = arith.constant 0 : i32
    %c0_i32_0 = arith.constant 0 : i32
    %c0_i32_1 = arith.constant 0 : i32
    return %c0_i32, %c0_i32_0 : i32, i32
  }
  func.func @transform_2(%arg0: i32) -> (i32, i32) {
    %c0_i32 = arith.constant 0 : i32
    %c0_i32_0 = arith.constant 0 : i32
    %c0_i32_1 = arith.constant 0 : i32
    return %c0_i32, %c0_i32_0 : i32, i32
  }
  func.func @transform_3(%arg0: i32) -> (i32, i32) {
    %c0_i32 = arith.constant 0 : i32
    %c0_i32_0 = arith.constant 0 : i32
    %c0_i32_1 = arith.constant 0 : i32
    return %c0_i32, %c0_i32_0 : i32, i32
  }
  func.func @transform_4(%arg0: i32) -> (i32, i32) {
    %c0_i32 = arith.constant 0 : i32
    %c0_i32_0 = arith.constant 0 : i32
    %c0_i32_1 = arith.constant 0 : i32
    return %c0_i32, %c0_i32_0 : i32, i32
  }
  func.func @transform_5(%arg0: i32) -> (i32, i32) {
    %c0_i32 = arith.constant 0 : i32
    %c0_i32_0 = arith.constant 0 : i32
    %c0_i32_1 = arith.constant 0 : i32
    return %c0_i32, %c0_i32_0 : i32, i32
  }
  func.func @transform_6(%arg0: i32) -> (i32, i32) {
    %c0_i32 = arith.constant 0 : i32
    %c0_i32_0 = arith.constant 0 : i32
    %c0_i32_1 = arith.constant 0 : i32
    return %c0_i32, %c0_i32_0 : i32, i32
  }
  func.func @transform_7(%arg0: i32) -> (i32, i32) {
    %c0_i32 = arith.constant 0 : i32
    %c0_i32_0 = arith.constant 0 : i32
    %c0_i32_1 = arith.constant 0 : i32
    return %c0_i32, %c0_i32_0 : i32, i32
  }
  func.func @transform_8(%arg0: i32) -> (i32, i32) {
    %c0_i32 = arith.constant 0 : i32
    %c0_i32_0 = arith.constant 0 : i32
    %c0_i32_1 = arith.constant 0 : i32
    return %c0_i32, %c0_i32_0 : i32, i32
  }
  func.func @transform_9(%arg0: i32) -> (i32, i32) {
    %c0_i32 = arith.constant 0 : i32
    %c0_i32_0 = arith.constant 0 : i32
    %c0_i32_1 = arith.constant 0 : i32
    return %c0_i32, %c0_i32_0 : i32, i32
  }
  func.func @transform_10(%arg0: i32) -> (i32, i32, i32) {
    %c0_i32 = arith.constant 0 : i32
    %c0_i32_0 = arith.constant 0 : i32
    %c0_i32_1 = arith.constant 0 : i32
    return %arg0, %c0_i32, %c0_i32_0 : i32, i32, i32
  }
  func.func @transform_11(%arg0: i32) -> (i32, i32, i32) {
    %c0_i32 = arith.constant 0 : i32
    %c0_i32_0 = arith.constant 0 : i32
    %c0_i32_1 = arith.constant 0 : i32
    return %arg0, %c0_i32, %c0_i32_0 : i32, i32, i32
  }
  func.func @transform_12(%arg0: i32) -> (i32, i32, i32) {
    %c0_i32 = arith.constant 0 : i32
    %c0_i32_0 = arith.constant 0 : i32
    %c0_i32_1 = arith.constant 0 : i32
    return %arg0, %c0_i32, %c0_i32_0 : i32, i32, i32
  }
}

</mosaic_0001>

<bundles_post_ra>
// kernel: tpu_custom_call.1
= control target key start
LH: loop header
LB: loop body
LE: loop exit
PB: predicated region body
PF: predicated region fallthrough
CT: control target
= control target key end

     0   :  { %18 = vsyncpa [#allocation3], 0  ;;  %s3359_s0 = inlined_call_operand.vmem [shape: f32[2,8,64], index: 0, kind: input, shape index: {}]   ;;  %s3360_s1 = inlined_call_operand.hbm [shape: f32[64,384], index: 1, kind: input, shape index: {}]   ;;  %s3361_s2 = inlined_call_operand.vmem [shape: bf16[8,128], index: 2, kind: input, shape index: {}]   ;;  %s3362_s3 = inlined_call_operand.vmem [shape: f32[8,1], index: 3, kind: input, shape index: {}]   ;;  %s3363_s4 = inlined_call_operand.vmem [shape: f32[1,384], index: 4, kind: input, shape index: {}]   ;;  %s3364_s5 = inlined_call_operand.vmem [shape: bf16[8,128], index: 5, kind: input, shape index: {}]   ;;  %s3365_s6 = inlined_call_operand.vmem [shape: f32[8,1], index: 6, kind: input, shape index: {}]   ;;  %s3366_s7 = inlined_call_operand.hbm [shape: f32[384,256], index: 7, kind: input, shape index: {}]   ;;  %s3367_s8 = inlined_call_operand.vmem [shape: f32[8,1], index: 8, kind: input, shape index: {}]   ;;  %s3368_s9 = inlined_call_operand.vmem [shape: f32[8,1], index: 9, kind: input, shape index: {}]   ;;  %s3369_s10 = inlined_call_operand.vmem [shape: f32[2,8,1], index: 10, kind: input, shape index: {}]   ;;  %s3370_s11 = inlined_call_operand.hbm [shape: f32[2,8,256], index: 11, kind: output, shape index: {0}]   ;;  %s3371_s12 = inlined_call_operand.vmem [shape: f32[2,8,1], index: 12, kind: output, shape index: {1}]  }
   0x1   :  { %19 = vsyncpa [#allocation6], 0 }
   0x2   :  { %20 = vsyncpa [#allocation4], 0 }
   0x3   :  { %22 = vsyncpa [#allocation4 + $0x1], 0  ;;  %s2634_s21 = smov 0   ;;  %s2636_s22 = smov 0  }
   0x4   :  { %s2638_s23 = smov 0   ;;  %s2640_s24 = smov 0  }
   0x5 LB: > { %3390 = sst [smem:[#allocation11_spill]] %s2528_s21  ;;  %s2655_s25 = sadd.s32 4294967295, %s2540_s24   ;;  %s2540_s24 = sphi %s2640_s24, %s3417_s24   ;;  %s2536_s23 = sphi %s2638_s23, %s3419_s23   ;;  %s2532_s22 = sphi %s2636_s22, %s3421_s22   ;;  %s2528_s21 = sphi %s2634_s21, %s3420_s21  }
   0x6   : > { %3391 = sst [smem:[#allocation12_spill]] %s2536_s23  ;;  %s1939_s26 = sadd.s32 4294967294, %s2540_s24  }
   0x7   : > { %3392 = sst [smem:[#allocation13_spill]] %s2540_s24  ;;  %s2659_s27 = sadd.s32 1, %s2540_s24  }
   0x8   : > { %3393 = sst [smem:[#allocation14_spill]] %s2659_s27  ;;  %s276_s28 = sadd.s32 1, %s2536_s23 }
   0x9   : > { %s273_s29 = ssub.s32 %s2540_s24, %s2659_s27  ;;  %p286_p0 = scmp.ne.s32.totalorder %s2536_s23, %s2532_s22 }
   0xa   : > { %p274_p1 = scmp.eq.s32.totalorder %s273_s29, 0  ;;  %p287_p2 = scmp.eq.s32.totalorder %s2655_s25, 1 }
   0xb   : > { %p292_p3 = scmp.ne.s32.totalorder %s2532_s22, %s2528_s21  ;;  %p293_p4 = scmp.eq.s32.totalorder %s1939_s26, 1 }
   0xc   : > { %s2670_s30 = scalar_select %p274_p1, %s2536_s23, %s276_s28  }
   0xd   : > { %p2672_p5 = por %p287_p2, %p286_p0  ;;  %p2676_p6 = por %p293_p4, %p292_p3 }
   0xe   : > { %3394 = sst [smem:[#allocation15_spill]] %s2670_s30  ;;  %p1940_p7 = scmp.ge.s32.totalorder %s2540_s24, 1 }
   0xf   : > { %s3395_s13 = scalar_select %p2672_p5, 1, 0 }
  0x10   : > { %s3396_s14 = scalar_select %p2676_p6, 1, 0 }
  0x11   : > { %p326_p8 = scmp.lt.s32.totalorder %s2540_s24, 3  ;;  %p3375_p9 = scmp.eq.s32.totalorder %s2655_s25, 0 }
  0x12   : > { %3397 = sst [smem:[#allocation16_spill]] %s3396_s14  ;;  %s2542_s16 = smov [#allocation2]  }
  0x13   : > { %p2683_p10 = pnand %p1940_p7, %p326_p8  ;;  %s338_s17 = sshll.u32 %s2542_s16, 4  ;;  %s339_s17 = int_to_ptr.vmem [resolvable:$true] %s338_s17 }
  0x14   : > { %s2543_s19 = smov [#allocation5]   ;;  %s2414_s29 = scalar_lea.hbm %s3360_s1, 3072 }
  0x15   : > { %s3398_s15 = scalar_select %p2683_p10, 1, 0 }
  0x16   : > { %p2181_p11 = pneg %p2683_p10  ;;  %s366_s20 = sshll.u32 %s2543_s19, 4  ;;  %s2695_s20 = int_to_ptr.vmem [resolvable:$true] %s366_s20 }
  0x17   : > { %p2415_p13 = scmp.ne.s32.totalorder %s3360_s1, %s2414_s29  ;;  %p2421_p3 = scmp.lt.u32.totalorder %s2414_s29, %s3360_s1 }
  0x18   : > { %p2691_p12 = pnand %p3375_p9, %p2181_p11 }
  0x1a   : > { %p2416_p0 = pneg %p2691_p12 }
  0x1c   : > { %p2417_p1 = pnand %p2416_p0, %p2415_p13 }
  0x1e   : > { %p2418_p2 = pneg %p2417_p1 }
  0x20   : > { %p2423_p4 = pnand %p2421_p3, %p2418_p2 }
  0x22   : > { %2426 = shalt.err (!%p2423_p4)
}
  0x23   : > { %s2427_s19 = scalar_lea.vmem %s339_s17, 3072  ;;  %p2435_p9 = scmp.lt.s32.totalorder %s339_s17, %s339_s17 }
  0x24   : > { %p2428_p7 = scmp.ne.s32.totalorder %s339_s17, %s2427_s19  ;;  %p2436_p6 = scmp.lt.s32.totalorder %s2427_s19, %s2427_s19 }
  0x26   : > { %p2430_p8 = pnand %p2428_p7, %p2416_p0  ;;  %p2437_p5 = por %p2436_p6, %p2435_p9 }
  0x28   : > { %p2431_p11 = pneg %p2430_p8 }
  0x2a   : > { %p2438_p10 = pnand %p2437_p5, %p2431_p11 }
  0x2c   : > { %2441 = shalt.err (!%p2438_p10)
}
  0x2d   : > { %s2544_s30 = smov 384   ;;  %s2545_s26 = smov 24  }
  0x2e   : > { %2184 = dma.hbm_to_vmem [thread:$0]  (!%p2691_p12), %s3360_s1, 3072, %s339_s17, [#allocation3], %s2544_s30, %s2544_s30, %s2545_s26  }
  0x2f   : > { %s2442_s16 = scalar_lea.hbm %s3366_s7, 12288 }
  0x30   : > { %p2443_p13 = scmp.ne.s32.totalorder %s3366_s7, %s2442_s16  ;;  %p2449_p9 = scmp.lt.u32.totalorder %s2442_s16, %s3366_s7 }
  0x32   : > { %p2445_p5 = pnand %p2443_p13, %p2416_p0 }
  0x34   : > { %p2446_p6 = pneg %p2445_p5 }
  0x36   : > { %p2451_p10 = pnand %p2449_p9, %p2446_p6 }
  0x38   : > { %2454 = shalt.err (!%p2451_p10)
}
  0x39   : > { %s2455_s17 = scalar_lea.vmem %s2695_s20, 12288  ;;  %p2463_p4 = scmp.lt.s32.totalorder %s2695_s20, %s2695_s20 }
  0x3a   : > { %p2456_p1 = scmp.ne.s32.totalorder %s2695_s20, %s2455_s17  ;;  %p2464_p7 = scmp.lt.s32.totalorder %s2455_s17, %s2455_s17 }
  0x3c   : > { %p2458_p2 = pnand %p2456_p1, %p2416_p0  ;;  %p2465_p8 = por %p2464_p7, %p2463_p4 }
  0x3e   : > { %p2459_p3 = pneg %p2458_p2 }
  0x40   : > { %p2466_p11 = pnand %p2465_p8, %p2459_p3 }
  0x42   : > { %2469 = shalt.err (!%p2466_p11)
}
  0x43   : > { %s2546_s21 = smov 256   ;;  %s2547_s24 = smov 16  }
  0x44   : > { %2187 = dma.hbm_to_vmem [thread:$0]  (!%p2691_p12), %s3366_s7, 12288, %s2695_s20, [#allocation6], %s2546_s21, %s2546_s21, %s2547_s24  }
  0x45   : > { %p3400_p13 = scmp.ne.s32.totalorder %s3398_s15, 0 }
  0x46   : > { %p3401_p0 = scmp.eq.s32.totalorder (!%p3400_p13), %s2655_s25, 0 }
  0x47   : > { %402 = sbr.rel (%p3400_p13) target bundleno = 1975 (0x7b7), region = 64 }
  0x4e   : > { %2515 = dma.done.wait (%p3401_p0), [#allocation3], 3072   ;;  %p3402_p5 = pmov %p3401_p0 }
  0x4f   : > { %p3403_p6 = pmov %p3401_p0 }
  0x50   : > { %2517 = vsyncadd (%p3402_p5), [#allocation3], 4294964224 }
  0x51   : > { %2519 = dma.done.wait (%p3403_p6), [#allocation6], 12288   ;;  %p3404_p9 = pmov %p3401_p0 }
  0x52   : > { %v2548_v0 = vmov 0.0   ;;  %p455_p12 = scmp.lt.s32.totalorder %s2655_s25, 1  ;;  %v473_v1 = vld [vmem:[#allocation2 + $0x8] sm:$0xff]  ;;  %v476_v2 = vld [vmem:[#allocation2 + $0x20] sm:$0xff]  ;;  %v475_v5 = vld [vmem:[#allocation2 + $0x18] sm:$0xff]  ;;  %vm496_vm1 = vcmask 523264   ;;  %v650_v51 = vlaneseq }
  0x53   : > { %2521 = vsyncadd (%p3404_p9), [#allocation6], 4294955008  ;;  %564 = vmatprep.mubr.f32.mxu1 %v2548_v0  ;;  %v472_v3 = vld [vmem:[#allocation2] sm:$0xff]  ;;  %v2045_v4 = vpack.c.bf16 %v476_v2, %v473_v1  ;;  %v479_v6 = vld [vmem:[#allocation2 + $0x38] sm:$0xff]  ;;  %v2549_v31 = vmov 0.0|0.0   ;;  %vm2550_vm2 = vmmov 0  }
  0x54   : > { %s456_s15 = scalar_select %p455_p12, %s2655_s25, 1  ;;  %v482_v7 = vld [vmem:[#allocation2 + $0x50] sm:$0xff]  ;;  %v2047_v8 = vpack.c.bf16 %v475_v5, %v472_v3  ;;  %v481_v11 = vld [vmem:[#allocation2 + $0x48] sm:$0xff]  ;;  %v488_v13 = vld [vmem:[#allocation2 + $0x80] sm:$0xff]  ;;  %v2566_v46 = vmov 0   ;;  %v2830_v54 = vand.u32 127, %v650_v51 }
  0x55   : > { %v2049_v9 = vpack.c.bf16 %v482_v7, %v479_v6  ;;  %v478_v10 = vld [vmem:[#allocation2 + $0x30] sm:$0xff]  ;;  %v485_v12 = vld [vmem:[#allocation2 + $0x68] sm:$0xff]  ;;  %2046 = vmatprep.subr.bf16.mxu1 %v2045_v4  ;;  %v484_v16 = vld [vmem:[#allocation2 + $0x60] sm:$0xff]  ;;  %s2551_s27 = smov 125   ;;  %s2552_s28 = smov 127   ;;  %2330 = vset.pattern.permute.xlu0 %v2566_v46  ;;  %vm889_vm5 = vcmask 1043456  }
  0x56   : > { %s2757_s18 = sshll.u32 %s456_s15, 3  ;;  %2048 = vmatpush1.bf16.msra.mxu1 %v2047_v8  ;;  %v2051_v14 = vpack.c.bf16 %v481_v11, %v478_v10  ;;  %v2053_v15 = vpack.c.bf16 %v488_v13, %v485_v12  ;;  %v487_v17 = vld [vmem:[#allocation2 + $0x78] sm:$0xff]  ;;  %v494_v19 = vld [vmem:[#allocation2 + $0xb0] sm:$0xff]  ;;  %v493_v23 = vld [vmem:[#allocation2 + $0xa8] sm:$0xff]  ;;  %s2553_s29 = smov 126   ;;  %1470 = vmatprep.mubr.bf16.mxu0 %v2566_v46  ;;  %vm652_vm3 = vcmp.lt.s32.totalorder %v2830_v54, 127 }
  0x57   : > { %2050 = vmatprep.subr.bf16.mxu1 %v2049_v9  ;;  %v491_v18 = vld [vmem:[#allocation2 + $0x98] sm:$0xff]  ;;  %s458_s23 = scalar_lea.vmem %s3359_s0, %s2757_s18  ;;  %v2055_v20 = vpack.c.bf16 %v487_v17, %v484_v16  ;;  %v490_v22 = vld [vmem:[#allocation2 + $0x90] sm:$0xff]  ;;  %v477_v28 = vld [vmem:[#allocation2 + $0x28] sm:$0xff]  ;;  %s2554_s16 = smov 108   ;;  %2411 = vset.pattern.permute.xlu1 %v2566_v46  ;;  %vm665_vm4 = vcmp.lt.s32.totalorder %v2830_v54, 126  ;;  %vm704_vm6 = vcmp.lt.s32.totalorder %v2830_v54, 108 }
  0x58   : > { %v2057_v21 = vpack.c.bf16 %v494_v19, %v491_v18  ;;  %v468_v24 = vld [vmem:[%s458_s23] sm:$0xff]  ;;  %v2059_v25 = vpack.c.bf16 %v493_v23, %v490_v22  ;;  %v474_v27 = vld [vmem:[#allocation2 + $0x10] sm:$0xff]  ;;  %v483_v33 = vld [vmem:[#allocation2 + $0x58] sm:$0xff]  ;;  %s2555_s19 = smov 109   ;;  %s2556_s17 = smov 106   ;;  %vm678_vm7 = vcmp.lt.s32.totalorder %v2830_v54, 125 }
  0x59   : > { %v470_v26 = vmul.f32 0.2, %v468_v24  ;;  %vm469_vm0 = vcmp.ge.f32.partialorder %v468_v24, 0.0  ;;  %v2062_v30 = vpack.c.bf16 %v477_v28, %v474_v27  ;;  %v480_v32 = vld [vmem:[#allocation2 + $0x40] sm:$0xff]  ;;  %v486_v35 = vld [vmem:[#allocation2 + $0x70] sm:$0xff]  ;;  %v489_v36 = vld [vmem:[#allocation2 + $0x88] sm:$0xff] }
  0x5a   : > { %2052 = vmatpush1.bf16.msra.mxu1 %v2051_v14  ;;  %v2065_v34 = vpack.c.bf16 %v483_v33, %v480_v32  ;;  %v2068_v37 = vpack.c.bf16 %v489_v36, %v486_v35  ;;  %v492_v38 = vld [vmem:[#allocation2 + $0xa0] sm:$0xff]  ;;  %v495_v39 = vld [vmem:[#allocation2 + $0xb8] sm:$0xff]  ;;  %s3381_s21 = smov 107   ;;  %s2558_s24 = smov 89   ;;  %vm691_vm8 = vcmp.lt.s32.totalorder %v2830_v54, 109  ;;  %vm730_vm9 = vcmp.lt.s32.totalorder %v2830_v54, 106 }
  0x5b   : > { %2054 = vmatprep.subr.bf16.mxu1 %v2053_v15  ;;  %v471_v29 = vsel %vm469_vm0, %v468_v24, %v470_v26  ;;  %v2071_v40 = vpack.c.bf16 %v495_v39, %v492_v38  ;;  %s3385_s14 = smov 90   ;;  %s3383_s30 = smov 87   ;;  %v987_v47 = vld [vmem:[%s3362_s3] sm:$0xff]  ;;  %vm3387_vm10 = vcmp.lt.s32.totalorder %v2830_v54, 107  ;;  %vm756_vm11 = vcmp.lt.s32.totalorder %v2830_v54, 89 }
  0x5c   : > { %s2561_s15 = smov 88   ;;  %s2562_s20 = smov 70   ;;  %vm743_vm12 = vcmp.lt.s32.totalorder %v2830_v54, 90  ;;  %vm782_vm13 = vcmp.lt.s32.totalorder %v2830_v54, 87  ;;  %vm769_vm14 = vcmp.lt.s32.totalorder %v2830_v54, 88  ;;  %vm808_vm15 = vcmp.lt.s32.totalorder %v2830_v54, 70 }
  0x5d   : > { %s2563_s26 = smov 71   ;;  %s2564_s23 = smov 68   ;;  %vm795_vm0 = vcmp.lt.s32.totalorder %v2830_v54, 71 }
  0x5e   : > { %2056 = vmatpush1.bf16.msra.mxu1 %v2055_v20  ;;  %p3412_p1 = scmp.ne.s32.totalorder %s3395_s13, 0 }
  0x5f   : > { %2058 = vmatprep.subr.bf16.mxu1 %v2057_v21 }
  0x62   : > { %2060 = vmatpush1.bf16.msra.mxu1 %v2059_v25 }
  0x63   : > { %2061 = vmatprep.subr.bf16.mxu1 %v2549_v31 }
  0x65   : > { %1951 = vmatmul.mubr.msk.f32.vlgmr.msra.gmra.mrb[0].mxu1 %vm496_vm1, %v471_v29 }
  0x66   : > { %2063 = vmatpush3.bf16.msra.mxu1 %v2062_v30  ;;  %2002 = vmatprep.mubr.msk.f32.mxu1 %vm2550_vm2, %v2548_v0 }
  0x67   : > { %2064 = vmatprep.subr.bf16.mxu1 %v2549_v31 }
  0x6a   : > { %2066 = vmatpush3.bf16.msra.mxu1 %v2065_v34 }
  0x6b   : > { %2067 = vmatprep.subr.bf16.mxu1 %v2549_v31 }
  0x6e   : > { %2069 = vmatpush3.bf16.msra.mxu1 %v2068_v37 }
  0x6f   : > { %2070 = vmatprep.subr.bf16.mxu1 %v2549_v31 }
  0x72   : > { %2072 = vmatpush3.bf16.msra.mxu1 %v2071_v40 }
  0x75   : > { %2003 = vmatmul.mubr.msk.f32.vlgmr.msra.gmra.mrb[2].mxu1 %vm496_vm1, %v471_v29  ;;  %vm834_vm1 = vcmp.lt.s32.totalorder %v2830_v54, 68 }
  0x76   : > { %1025 = vmatprep.mubr.bf16.mxu1 %v2566_v46 }
 0x138   : > { %v2767_v41 = vpop.f32.mrb[0].mxu1 }
 0x139   : > { %672 = vrot.lane.b32.xlu1 %v2767_v41, %s2551_s27  ;;  %v2771_v42 = vpop.f32.mrb[1].mxu1  ;;  %644 = vrot.lane.b32.xlu0 %v2767_v41, %s2552_s28  ;;  %v641_v8 = vpack.c.bf16 %v2767_v41, %v2767_v41 }
 0x13a   : > { %v642_v6 = vpack.c.bf16 %v2771_v42, %v2771_v42 }
 0x13d   : > { %659 = vrot.lane.b32.xlu1 %v2767_v41, %s2553_s29 }
 0x141   : > { %698 = vrot.lane.b32.xlu1 %v2767_v41, %s2554_s16 }
 0x145   : > { %685 = vrot.lane.b32.xlu1 %v2767_v41, %s2555_s19 }
 0x148   : > { %v2781_v43 = vpop.f32.mrb[2].mxu1 }
 0x149   : > { %724 = vrot.lane.b32.xlu1 %v2767_v41, %s2556_s17  ;;  %v2004_v44 = vpop.f32.mrb[3].mxu1  ;;  %v2255_v45 = vpack.i.bf16 %v2781_v43, %v2771_v42 }
 0x14b   : > { %2256 = vrot.lane.b32.xlu0 %v2255_v45, %s2552_s28 }
 0x14d   : > { %711 = vrot.lane.b32.xlu1 %v2767_v41, %s3381_s21 }
 0x14f   : > { %2266 = vrot.lane.b32.xlu0 %v2255_v45, %s2553_s29 }
 0x151   : > { %750 = vrot.lane.b32.xlu1 %v2767_v41, %s2558_s24 }
 0x153   : > { %2271 = vrot.lane.b32.xlu0 %v2255_v45, %s2554_s16 }
 0x155   : > { %2261 = vrot.lane.b32.xlu1 %v2255_v45, %s2551_s27 }
 0x157   : > { %2276 = vrot.lane.b32.xlu0 %v2255_v45, %s2555_s19 }
 0x159   : > { %737 = vrot.lane.b32.xlu1 %v2767_v41, %s3385_s14 }
 0x15b   : > { %2281 = vrot.lane.b32.xlu0 %v2255_v45, %s2556_s17 }
 0x15d   : > { %776 = vrot.lane.b32.xlu1 %v2767_v41, %s3383_s30 }
 0x15f   : > { %2286 = vrot.lane.b32.xlu0 %v2255_v45, %s3381_s21  ;;  %s3388_s21 = smov 69  }
 0x161   : > { %763 = vrot.lane.b32.xlu1 %v2767_v41, %s2561_s15 }
 0x163   : > { %2291 = vrot.lane.b32.xlu0 %v2255_v45, %s2558_s24 }
 0x165   : > { %802 = vrot.lane.b32.xlu1 %v2767_v41, %s2562_s20 }
 0x167   : > { %2296 = vrot.lane.b32.xlu0 %v2255_v45, %s3385_s14  ;;  %s2568_s14 = smov [#allocation7]  }
 0x169   : > { %789 = vrot.lane.b32.xlu1 %v2767_v41, %s2563_s26 }
 0x16b   : > { %2301 = vrot.lane.b32.xlu0 %v2255_v45, %s3383_s30  ;;  %s2474_s30 = sshll.u32 %s2568_s14, 4  ;;  %s2475_s30 = int_to_ptr.vmem [resolvable:$false] %s2474_s30 }
 0x16d   : > { %828 = vrot.lane.b32.xlu1 %v2767_v41, %s2564_s23 }
 0x16f   : > { %2306 = vrot.lane.b32.xlu0 %v2255_v45, %s2561_s15 }
 0x171   : > { %815 = vrot.lane.b32.xlu1 %v2767_v41, %s3388_s21 }
 0x173   : > { %2311 = vrot.lane.b32.xlu0 %v2255_v45, %s2562_s20 }
 0x177   : > { %2316 = vrot.lane.b32.xlu0 %v2255_v45, %s2563_s26 }
 0x17b   : > { %2321 = vrot.lane.b32.xlu0 %v2255_v45, %s2564_s23 }
 0x17f   : > { %2326 = vrot.lane.b32.xlu0 %v2255_v45, %s3388_s21  ;;  %s2567_s21 = smov 20  }
 0x183   : > { %990 = vperm.xlu0 %2330, %v987_v47  }
 0x1ab   : > { %v2823_v48 = vpop.permute.xlu1 %672  ;;  %v2827_v53 = vpop.permute.xlu0 %644 }
 0x1af   : > { %v660_v49 = vpop.permute.xlu1 %659 }
 0x1b3   : > { %v699_v50 = vpop.permute.xlu1 %698 }
 0x1b7   : > { %v2825_v52 = vpop.permute.xlu1 %685 }
 0x1bb   : > { %v2832_v55 = vpop.permute.xlu1 %724 }
 0x1bd   : > { %v2835_v56 = vpop.permute.xlu0 %2256 }
 0x1be   : > { %v2259_v57 = vunpack.i.h.bf16 %v2835_v56  ;;  %v2258_v58 = vunpack.i.l.bf16 %v2835_v56 }
 0x1bf   : > { %v2839_v59 = vpop.permute.xlu1 %711 }
 0x1c0   : > { %v653_v60 = vsel %vm652_vm3, %v2258_v58, %v2259_v57  ;;  %v654_v61 = vsel %vm652_vm3, %v2827_v53, %v2258_v58 }
 0x1c1   : > { %v656_v62 = vpack.c.bf16 %v654_v61, %v654_v61  ;;  %v657_v63 = vpack.c.bf16 %v653_v60, %v653_v60  ;;  %v2267_v1 = vpop.permute.xlu0 %2266 }
 0x1c2   : > { %v2269_v2 = vunpack.i.h.bf16 %v2267_v1  ;;  %v2268_v3 = vunpack.i.l.bf16 %v2267_v1 }
 0x1c3   : > { %v844_v4 = vrot.slane %v656_v62, 4  ;;  %v2849_v5 = vpop.permute.xlu1 %750  ;;  %v845_v7 = vrot.slane %v657_v63, 4 }
 0x1c4   : > { %v668_v9 = vsel %vm665_vm4, %v2269_v2, %v660_v49  ;;  %v2859_v10 = vsel %vm665_vm4, %v660_v49, %v2268_v3  ;;  %v666_v14 = vsel %vm665_vm4, %v2268_v3, %v2269_v2 }
 0x1c5   : > { %v2272_v11 = vpop.permute.xlu0 %2271  ;;  %v896_v12 = vsel %vm889_vm5, %v642_v6, %v845_v7  ;;  %v892_v13 = vsel %vm889_vm5, %v641_v8, %v844_v4  ;;  %v671_v17 = vpack.c.bf16 %v668_v9, %v668_v9  ;;  %v669_v18 = vpack.c.bf16 %v2859_v10, %v2859_v10 }
 0x1c6   : > { %v2274_v15 = vunpack.i.h.bf16 %v2272_v11  ;;  %v2273_v16 = vunpack.i.l.bf16 %v2272_v11  ;;  %993 = vmatprep.subr.bf16.mxu1 %v896_v12  ;;  %v670_v28 = vpack.c.bf16 %v666_v14, %v666_v14 }
 0x1c7   : > { %v2262_v19 = vpop.permute.xlu1 %2261  ;;  %994 = vmatpush1.bf16.msra.mxu1 %v892_v13 }
 0x1c8   : > { %v707_v20 = vsel %vm704_vm6, %v2274_v15, %v699_v50  ;;  %v705_v21 = vsel %vm704_vm6, %v2273_v16, %v2274_v15  ;;  %v706_v22 = vsel %vm704_vm6, %v699_v50, %v2273_v16  ;;  %v2264_v23 = vunpack.i.h.bf16 %v2262_v19 }
 0x1c9   : > { %v710_v24 = vpack.c.bf16 %v707_v20, %v707_v20  ;;  %v708_v25 = vpack.c.bf16 %v706_v22, %v706_v22  ;;  %v2263_v26 = vunpack.i.l.bf16 %v2262_v19  ;;  %v2277_v27 = vpop.permute.xlu0 %2276  ;;  %v709_v29 = vpack.c.bf16 %v705_v21, %v705_v21 }
 0x1ca   : > { %v681_v30 = vsel %vm678_vm7, %v2264_v23, %v2823_v48  ;;  %v2279_v31 = vunpack.i.h.bf16 %v2277_v27  ;;  %v2278_v32 = vunpack.i.l.bf16 %v2277_v27 }
 0x1cb   : > { %v858_v33 = vrot.slane %v710_v24, 4  ;;  %v856_v34 = vrot.slane %v708_v25, 4  ;;  %v684_v35 = vpack.c.bf16 %v681_v30, %v681_v30  ;;  %v679_v36 = vsel %vm678_vm7, %v2263_v26, %v2264_v23  ;;  %v2894_v60 = vpop.permute.xlu1 %737 }
 0x1cc   : > { %v680_v37 = vsel %vm678_vm7, %v2823_v48, %v2263_v26  ;;  %v683_v38 = vpack.c.bf16 %v679_v36, %v679_v36  ;;  %v694_v39 = vsel %vm691_vm8, %v2279_v31, %v2825_v52  ;;  %v692_v40 = vsel %vm691_vm8, %v2278_v32, %v2279_v31 }
 0x1cd   : > { %v852_v41 = vrot.slane %v684_v35, 4  ;;  %v682_v42 = vpack.c.bf16 %v680_v37, %v680_v37  ;;  %v697_v44 = vpack.c.bf16 %v694_v39, %v694_v39  ;;  %v693_v45 = vsel %vm691_vm8, %v2825_v52, %v2278_v32  ;;  %v2282_v46 = vpop.permute.xlu0 %2281 }
 0x1ce   : > { %v695_v47 = vpack.c.bf16 %v693_v45, %v693_v45  ;;  %v2284_v49 = vunpack.i.h.bf16 %v2282_v46  ;;  %v2283_v50 = vunpack.i.l.bf16 %v2282_v46  ;;  %v851_v48 = vrot.slane %v683_v38, 4 }
 0x1cf   : > { %v850_v58 = vrot.slane %v682_v42, 4  ;;  %v696_v61 = vpack.c.bf16 %v692_v40, %v692_v40  ;;  %v857_v62 = vrot.slane %v709_v29, 4  ;;  %v2897_v63 = vsel %vm889_vm5, %v671_v17, %v852_v41  ;;  %v2923_v19 = vpop.permute.xlu1 %776 }
 0x1d0   : > { %v733_v1 = vsel %vm730_vm9, %v2284_v49, %v2832_v55  ;;  %v731_v52 = vsel %vm730_vm9, %v2283_v50, %v2284_v49  ;;  %v732_v2 = vsel %vm730_vm9, %v2832_v55, %v2283_v50  ;;  %v908_v3 = vsel %vm889_vm5, %v670_v28, %v851_v48 }
 0x1d1   : > { %v736_v4 = vpack.c.bf16 %v733_v1, %v733_v1  ;;  %v734_v6 = vpack.c.bf16 %v732_v2, %v732_v2  ;;  %v735_v7 = vpack.c.bf16 %v731_v52, %v731_v52  ;;  %995 = vmatprep.subr.bf16.mxu1 %v908_v3  ;;  %v2287_v8 = vpop.permute.xlu0 %2286  ;;  %v904_v9 = vsel %vm889_vm5, %v669_v18, %v850_v58 }
 0x1d2   : > { %v2289_v10 = vunpack.i.h.bf16 %v2287_v8  ;;  %v2288_v11 = vunpack.i.l.bf16 %v2287_v8  ;;  %996 = vmatpush1.bf16.msra.mxu1 %v904_v9  ;;  %v920_v12 = vsel %vm889_vm5, %v696_v61, %v857_v62  ;;  %v916_v55 = vsel %vm889_vm5, %v695_v47, %v856_v34 }
 0x1d3   : > { %v864_v13 = vrot.slane %v736_v4, 4  ;;  %997 = vmatprep.subr.bf16.mxu1 %v920_v12  ;;  %v2913_v14 = vsel %vm889_vm5, %v697_v44, %v858_v33  ;;  %v862_v15 = vrot.slane %v734_v6, 4  ;;  %v863_v24 = vrot.slane %v735_v7, 4  ;;  %v2946_v36 = vpop.permute.xlu1 %763 }
 0x1d4   : > { %v720_v16 = vsel %vm3387_vm10, %v2289_v10, %v2839_v59  ;;  %v718_v17 = vsel %vm3387_vm10, %v2288_v11, %v2289_v10  ;;  %v719_v18 = vsel %vm3387_vm10, %v2839_v59, %v2288_v11  ;;  %vm821_vm10 = vcmp.lt.s32.totalorder %v2830_v54, 69 }
 0x1d5   : > { %v723_v20 = vpack.c.bf16 %v720_v16, %v720_v16  ;;  %v721_v21 = vpack.c.bf16 %v719_v18, %v719_v18  ;;  %v2925_v22 = vpop.permute.xlu0 %2291  ;;  %v722_v23 = vpack.c.bf16 %v718_v17, %v718_v17 }
 0x1d6   : > { %v2294_v25 = vunpack.i.h.bf16 %v2925_v22  ;;  %v2293_v26 = vunpack.i.l.bf16 %v2925_v22  ;;  %998 = vmatpush1.bf16.msra.mxu1 %v916_v55 }
 0x1d7   : > { %v932_v27 = vsel %vm889_vm5, %v722_v23, %v863_v24  ;;  %v928_v28 = vsel %vm889_vm5, %v721_v21, %v862_v15  ;;  %v2932_v29 = vsel %vm889_vm5, %v723_v20, %v864_v13  ;;  %v2969_v58 = vpop.permute.xlu1 %802 }
 0x1d8   : > { %v757_v59 = vsel %vm756_vm11, %v2293_v26, %v2294_v25  ;;  %v758_v30 = vsel %vm756_vm11, %v2849_v5, %v2293_v26  ;;  %999 = vmatprep.subr.bf16.mxu1 %v932_v27 }
 0x1d9   : > { %v760_v31 = vpack.c.bf16 %v758_v30, %v758_v30  ;;  %v761_v32 = vpack.c.bf16 %v757_v59, %v757_v59  ;;  %v2942_v33 = vpop.permute.xlu0 %2296 }
 0x1da   : > { %v2299_v34 = vunpack.i.h.bf16 %v2942_v33  ;;  %v2298_v35 = vunpack.i.l.bf16 %v2942_v33  ;;  %1000 = vmatpush1.bf16.msra.mxu1 %v928_v28 }
 0x1db   : > { %v868_v39 = vrot.slane %v760_v31, 4  ;;  %v869_v44 = vrot.slane %v761_v32, 4  ;;  %v2988_v13 = vpop.permute.xlu1 %789 }
 0x1dc   : > { %v744_v37 = vsel %vm743_vm12, %v2298_v35, %v2299_v34  ;;  %v745_v38 = vsel %vm743_vm12, %v2894_v60, %v2298_v35 }
 0x1dd   : > { %v747_v40 = vpack.c.bf16 %v745_v38, %v745_v38  ;;  %v2956_v41 = vpop.permute.xlu0 %2301  ;;  %v748_v42 = vpack.c.bf16 %v744_v37, %v744_v37 }
 0x1de   : > { %v2304_v45 = vunpack.i.h.bf16 %v2956_v41  ;;  %v2303_v46 = vunpack.i.l.bf16 %v2956_v41 }
 0x1df   : > { %v944_v47 = vsel %vm889_vm5, %v748_v42, %v869_v44  ;;  %v940_v49 = vsel %vm889_vm5, %v747_v40, %v868_v39  ;;  %v3012_v28 = vpop.permute.xlu1 %828 }
 0x1e0   : > { %v783_v50 = vsel %vm782_vm13, %v2303_v46, %v2304_v45  ;;  %v784_v48 = vsel %vm782_vm13, %v2923_v19, %v2303_v46  ;;  %1001 = vmatprep.subr.bf16.mxu1 %v944_v47  ;;  %v655_v46 = vsel %vm652_vm3, %v2259_v57, %v2827_v53 }
 0x1e1   : > { %v786_v61 = vpack.c.bf16 %v784_v48, %v784_v48  ;;  %v787_v62 = vpack.c.bf16 %v783_v50, %v783_v50  ;;  %v2972_v1 = vpop.permute.xlu0 %2306  ;;  %1002 = vmatpush1.bf16.msra.mxu1 %v940_v49 }
 0x1e2   : > { %v2309_v52 = vunpack.i.h.bf16 %v2972_v1  ;;  %v2308_v2 = vunpack.i.l.bf16 %v2972_v1 }
 0x1e3   : > { %v874_v6 = vrot.slane %v786_v61, 4  ;;  %v875_v10 = vrot.slane %v787_v62, 4  ;;  %v816_v62 = vpop.permute.xlu1 %815 }
 0x1e4   : > { %v770_v3 = vsel %vm769_vm14, %v2308_v2, %v2309_v52  ;;  %v771_v4 = vsel %vm769_vm14, %v2946_v36, %v2308_v2  ;;  %v658_v2 = vpack.c.bf16 %v655_v46, %v655_v46 }
 0x1e5   : > { %v773_v7 = vpack.c.bf16 %v771_v4, %v771_v4  ;;  %v2984_v8 = vpop.permute.xlu0 %2311  ;;  %v774_v9 = vpack.c.bf16 %v770_v3, %v770_v3 }
 0x1e6   : > { %v2314_v11 = vunpack.i.h.bf16 %v2984_v8  ;;  %v2313_v12 = vunpack.i.l.bf16 %v2984_v8 }
 0x1e7   : > { %v956_v55 = vsel %vm889_vm5, %v774_v9, %v875_v10  ;;  %v952_v15 = vsel %vm889_vm5, %v773_v7, %v874_v6  ;;  %v846_v10 = vrot.slane %v658_v2, 4 }
 0x1e8   : > { %v809_v16 = vsel %vm808_vm15, %v2313_v12, %v2314_v11  ;;  %v810_v17 = vsel %vm808_vm15, %v2969_v58, %v2313_v12  ;;  %1003 = vmatprep.subr.bf16.mxu1 %v956_v55  ;;  %v986_v12 = vld [vmem:[%s3361_s2] sm:$0xf]  ;;  %v643_v55 = vpack.c.bf16 %v2781_v43, %v2781_v43  ;;  %v746_v43 = vsel %vm743_vm12, %v2299_v34, %v2894_v60 }
 0x1e9   : > { %v812_v18 = vpack.c.bf16 %v810_v17, %v810_v17  ;;  %v813_v20 = vpack.c.bf16 %v809_v16, %v809_v16  ;;  %v3000_v21 = vpop.permute.xlu0 %2316  ;;  %1004 = vmatpush1.bf16.msra.mxu1 %v952_v15  ;;  %v759_v16 = vsel %vm756_vm11, %v2294_v25, %v2849_v5  ;;  %v749_v22 = vpack.c.bf16 %v746_v43, %v746_v43 }
 0x1ea   : > { %v2319_v23 = vunpack.i.h.bf16 %v3000_v21  ;;  %v2318_v24 = vunpack.i.l.bf16 %v3000_v21  ;;  %v900_v15 = vsel %vm889_vm5, %v643_v55, %v846_v10  ;;  %v762_v17 = vpack.c.bf16 %v759_v16, %v759_v16 }
 0x1eb   : > { %v880_v59 = vrot.slane %v812_v18, 4  ;;  %v881_v35 = vrot.slane %v813_v20, 4  ;;  %v772_v5 = vsel %vm769_vm14, %v2309_v52, %v2946_v36  ;;  %v811_v25 = vsel %vm808_vm15, %v2314_v11, %v2969_v58 }
 0x1ec   : > { %v796_v26 = vsel %vm795_vm0, %v2318_v24, %v2319_v23  ;;  %v797_v27 = vsel %vm795_vm0, %v2988_v13, %v2318_v24  ;;  %v870_v60 = vrot.slane %v762_v17, 4  ;;  %v798_v34 = vsel %vm795_vm0, %v2319_v23, %v2988_v13  ;;  %v1074_v24 = vld [vmem:[%s3363_s4] sm:$0x7] }
 0x1ed   : > { %v799_v30 = vpack.c.bf16 %v797_v27, %v797_v27  ;;  %v3014_v31 = vpop.permute.xlu0 %2321  ;;  %v800_v32 = vpack.c.bf16 %v796_v26, %v796_v26  ;;  %v814_v36 = vpack.c.bf16 %v811_v25, %v811_v25  ;;  %v1077_v21 = vshrl.u32 %v650_v51, 7 }
 0x1ee   : > { %v2324_v37 = vunpack.i.h.bf16 %v3014_v31  ;;  %v2323_v38 = vunpack.i.l.bf16 %v3014_v31  ;;  %v948_v33 = vsel %vm889_vm5, %v749_v22, %v870_v60 }
 0x1ef   : > { %v968_v39 = vsel %vm889_vm5, %v800_v32, %v881_v35  ;;  %v964_v40 = vsel %vm889_vm5, %v799_v30, %v880_v59  ;;  %v882_v52 = vrot.slane %v814_v36, 4  ;;  %v1078_v23 = vsub.s32 0, %v1077_v21 }
 0x1f0   : > { %v835_v42 = vsel %vm834_vm1, %v2323_v38, %v2324_v37  ;;  %v836_v44 = vsel %vm834_vm1, %v3012_v28, %v2323_v38  ;;  %1005 = vmatprep.subr.bf16.mxu1 %v968_v39  ;;  %v837_v41 = vsel %vm834_vm1, %v2324_v37, %v3012_v28  ;;  %v1082_v26 = vsub.s32 1, %v1077_v21 }
 0x1f1   : > { %v838_v47 = vpack.c.bf16 %v836_v44, %v836_v44  ;;  %v839_v49 = vpack.c.bf16 %v835_v42, %v835_v42  ;;  %v2327_v50 = vpop.permute.xlu0 %2326  ;;  %1006 = vmatpush1.bf16.msra.mxu1 %v964_v40  ;;  %v840_v8 = vpack.c.bf16 %v837_v41, %v837_v41  ;;  %v1079_v28 = vrot.slane %v1074_v24, %v1078_v23 }
 0x1f2   : > { %v2329_v48 = vunpack.i.h.bf16 %v2327_v50  ;;  %v2328_v61 = vunpack.i.l.bf16 %v2327_v50  ;;  %v1083_v30 = vrot.slane %v1074_v24, %v1082_v26  ;;  %v1086_v51 = vsub.s32 2, %v1077_v21 }
 0x1f3   : > { %v886_v56 = vrot.slane %v838_v47, 4  ;;  %v887_v53 = vrot.slane %v839_v49, 4  ;;  %v888_v18 = vrot.slane %v840_v8, 4 }
 0x1f4   : > { %v822_v3 = vsel %vm821_vm10, %v2328_v61, %v2329_v48  ;;  %v823_v4 = vsel %vm821_vm10, %v816_v62, %v2328_v61  ;;  %v824_v1 = vsel %vm821_vm10, %v2329_v48, %v816_v62  ;;  %v1087_v44 = vrot.slane %v1074_v24, %v1086_v51 }
 0x1f5   : > { %v825_v6 = vpack.c.bf16 %v823_v4, %v823_v4  ;;  %v826_v7 = vpack.c.bf16 %v822_v3, %v822_v3  ;;  %v827_v11 = vpack.c.bf16 %v824_v1, %v824_v1 }
 0x1f7   : > { %v980_v57 = vsel %vm889_vm5, %v826_v7, %v887_v53  ;;  %v976_v9 = vsel %vm889_vm5, %v825_v6, %v886_v56  ;;  %v984_v20 = vsel %vm889_vm5, %v827_v11, %v888_v18 }
 0x1f8   : > { %1007 = vmatprep.subr.bf16.mxu1 %v980_v57  ;;  %v1432_v57 = vld [vmem:[%s3365_s6] sm:$0xff] }
 0x1f9   : > { %1008 = vmatpush1.bf16.msra.mxu1 %v976_v9 }
 0x1fa   : > { %2005 = vmatprep.subr.bf16.mxu1 %v2548_v0 }
 0x1fc   : > { %1026 = vmatmul.mubr.bf16.vlgmr.msra.gmra.mrb[4].mxu1 %v986_v12 }
 0x1fd   : > { %2006 = vmatpush3.bf16.msra.mxu1 %v900_v15  ;;  %2021 = vmatprep.mubr.msk.bf16.mxu1 %vm2550_vm2, %v2548_v0 }
 0x1fe   : > { %2007 = vmatprep.subr.bf16.mxu1 %v2548_v0 }
 0x201   : > { %2008 = vmatpush3.bf16.msra.mxu1 %v2897_v63  ;;  %v785_v63 = vsel %vm782_vm13, %v2304_v45, %v2923_v19  ;;  %v775_v19 = vpack.c.bf16 %v772_v5, %v772_v5  ;;  %v801_v45 = vpack.c.bf16 %v798_v34, %v798_v34 }
 0x202   : > { %2009 = vmatprep.subr.bf16.mxu1 %v2548_v0  ;;  %v991_v27 = vpop.permute.xlu0 %990 }
 0x203   : > { %v972_v13 = vsel %vm889_vm5, %v801_v45, %v882_v52 }
 0x205   : > { %2010 = vmatpush3.bf16.msra.mxu1 %v2913_v14  ;;  %v788_v14 = vpack.c.bf16 %v785_v63, %v785_v63 }
 0x206   : > { %2011 = vmatprep.subr.bf16.mxu1 %v2548_v0 }
 0x209   : > { %2012 = vmatpush3.bf16.msra.mxu1 %v2932_v29  ;;  %v876_v29 = vrot.slane %v788_v14, 4 }
 0x20a   : > { %2013 = vmatprep.subr.bf16.mxu1 %v2548_v0 }
 0x20b   : > { %v960_v58 = vsel %vm889_vm5, %v775_v19, %v876_v29 }
 0x20d   : > { %2014 = vmatpush3.bf16.msra.mxu1 %v948_v33 }
 0x20e   : > { %2015 = vmatprep.subr.bf16.mxu1 %v2548_v0 }
 0x211   : > { %2016 = vmatpush3.bf16.msra.mxu1 %v960_v58 }
 0x212   : > { %2017 = vmatprep.subr.bf16.mxu1 %v2548_v0 }
 0x215   : > { %2018 = vmatpush3.bf16.msra.mxu1 %v972_v13 }
 0x216   : > { %2019 = vmatprep.subr.bf16.mxu1 %v2548_v0 }
 0x219   : > { %2020 = vmatpush3.bf16.msra.mxu1 %v984_v20 }
 0x21a   : > { %2025 = vmatprep.subr.bf16.mxu1 %v2548_v0 }
 0x21c   : > { %2022 = vmatmul.mubr.bf16.vlgmr.msra.gmra.mrb[8].mxu1 %v986_v12 }
 0x21d   : > { %2041 = vmatprep.mubr.msk.bf16.mxu1 %vm2550_vm2, %v2548_v0  ;;  %vm1100_vm2 = vcmp.lt.s32.totalorder %v2830_v54, 20 }
 0x2cf   : > { %v1027_v59 = vpop.f32.mrb[4].mxu1 }
 0x2d0   : > { %v1028_v31 = vadd.f32 %v1027_v59, %v991_v27  ;;  %v1029_v32 = vpop.f32.mrb[5].mxu1 }
 0x2d1   : > { %v1030_v35 = vadd.f32 %v1029_v32, %v991_v27  ;;  %v1031_v37 = vpop.f32.mrb[6].mxu1 }
 0x2d2   : > { %v1091_v38 = vmul.f32 %v1079_v28, %v1028_v31  ;;  %v1032_v39 = vpop.f32.mrb[7].mxu1 }
 0x2d3   : > { %v1092_v40 = vmul.f32 %v1083_v30, %v1030_v35 }
 0x2d5   : > { %v2331_v42 = vpack.i.bf16 %v1092_v40, %v1091_v38 }
 0x2d7   : > { %2332 = vrot.lane.b32.xlu1 %v2331_v42, %s2567_s21 }
 0x2ef   : > { %v1068_v46 = vpop.f32.mrb[8].mxu1 }
 0x2f0   : > { %v1069_v47 = vadd.f32 %v1068_v46, %v991_v27  ;;  %v2023_v49 = vpop.f32.mrb[9].mxu1 }
 0x2f1   : > { %v1071_v50 = vpop.f32.mrb[10].mxu1 }
 0x2f2   : > { %v1093_v48 = vmul.f32 %v1087_v44, %v1069_v47  ;;  %v2024_v61 = vpop.f32.mrb[11].mxu1 }
 0x2f4   : > { %1098 = vrot.lane.b32.xlu1 %v1093_v48, %s2567_s21 }
 0x349   : > { %v2333_v62 = vpop.permute.xlu1 %2332 }
 0x34a   : > { %v2335_v2 = vunpack.i.h.bf16 %v2333_v62  ;;  %v2334_v3 = vunpack.i.l.bf16 %v2333_v62 }
 0x34c   : > { %v3105_v6 = vsel %vm1100_vm2, %v2334_v3, %v2335_v2 }
 0x34d   : > { %v1105_v19 = vpack.c.bf16 %v3105_v6, %v3105_v6 }
 0x366   : > { %v1099_v4 = vpop.permute.xlu1 %1098 }
 0x367   : > { %v3103_v56 = vsel %vm1100_vm2, %v2335_v2, %v1099_v4  ;;  %v3107_v7 = vsel %vm1100_vm2, %v1099_v4, %v2334_v3 }
 0x368   : > { %1107 = vrot.lane.b32.xlu1 %v3107_v7, %s2552_s28  ;;  %v2336_v53 = vpack.i.bf16 %v3103_v56, %v3105_v6  ;;  %v1106_v36 = vpack.c.bf16 %v3103_v56, %v3103_v56  ;;  %v1104_v52 = vpack.c.bf16 %v3107_v7, %v3107_v7 }
 0x36a   : > { %2337 = vrot.lane.b32.xlu0 %v2336_v53, %s2552_s28  ;;  %s3406_s28 = smov 90  }
 0x36c   : > { %1131 = vrot.lane.b32.xlu1 %v3107_v7, %s2551_s27 }
 0x36e   : > { %2342 = vrot.lane.b32.xlu0 %v2336_v53, %s2551_s27  ;;  %s3405_s27 = smov 107  }
 0x370   : > { %1119 = vrot.lane.b32.xlu1 %v3107_v7, %s2553_s29 }
 0x372   : > { %2347 = vrot.lane.b32.xlu0 %v2336_v53, %s2553_s29  ;;  %s3407_s29 = smov 87  }
 0x374   : > { %1155 = vrot.lane.b32.xlu1 %v3107_v7, %s2554_s16 }
 0x376   : > { %2352 = vrot.lane.b32.xlu0 %v2336_v53, %s2554_s16  ;;  %s3408_s16 = smov 69  }
 0x378   : > { %1143 = vrot.lane.b32.xlu1 %v3107_v7, %s2555_s19 }
 0x37a   : > { %2357 = vrot.lane.b32.xlu0 %v2336_v53, %s2555_s19  ;;  %s446_s19 = sand.u32 1, %s2532_s22  }
 0x37c   : > { %1179 = vrot.lane.b32.xlu1 %v3107_v7, %s2556_s17 }
 0x37e   : > { %2362 = vrot.lane.b32.xlu0 %v2336_v53, %s2556_s17  ;;  %s1947_s17 = sshll.u32 %s446_s19, 4 }
 0x37f   : > { %s448_s21 = scalar_lea.vmem [#allocation7], %s1947_s17 }
 0x380   : > { %1167 = vrot.lane.b32.xlu1 %v3107_v7, %s3405_s27 }
 0x382   : > { %2367 = vrot.lane.b32.xlu0 %v2336_v53, %s3405_s27  ;;  %s2476_s27 = scalar_lea.vmem %s2475_s30, 512 }
 0x384   : > { %1203 = vrot.lane.b32.xlu1 %v3107_v7, %s2558_s24 }
 0x386   : > { %2372 = vrot.lane.b32.xlu0 %v2336_v53, %s2558_s24  ;;  %s1819_s24 = sshll.u32 %s448_s21, 4  ;;  %s3319_s24 = int_to_ptr.vmem [resolvable:$true] %s1819_s24 }
 0x387   : > { %p2477_p4 = scmp.lt.s32.totalorder %s3319_s24, %s2475_s30 }
 0x388   : > { %1191 = vrot.lane.b32.xlu1 %v3107_v7, %s3406_s28 }
 0x38a   : > { %2377 = vrot.lane.b32.xlu0 %v2336_v53, %s3406_s28  ;;  %s462_s28 = scalar_lea.vmem %s3369_s10, %s2757_s18 }
 0x38c   : > { %1227 = vrot.lane.b32.xlu1 %v3107_v7, %s3407_s29 }
 0x38e   : > { %2382 = vrot.lane.b32.xlu0 %v2336_v53, %s3407_s29 }
 0x390   : > { %1215 = vrot.lane.b32.xlu1 %v3107_v7, %s2561_s15 }
 0x392   : > { %2387 = vrot.lane.b32.xlu0 %v2336_v53, %s2561_s15 }
 0x394   : > { %1251 = vrot.lane.b32.xlu1 %v3107_v7, %s2562_s20 }
 0x396   : > { %2392 = vrot.lane.b32.xlu0 %v2336_v53, %s2562_s20 }
 0x398   : > { %1239 = vrot.lane.b32.xlu1 %v3107_v7, %s2563_s26 }
 0x39a   : > { %2397 = vrot.lane.b32.xlu0 %v2336_v53, %s2563_s26  ;;  %s466_s26 = scalar_lea.vmem %s3371_s12, %s2757_s18  ;;  %s1958_s18 = sshll.u32 %s2655_s25, 8 }
 0x39b   : > { %s1801_s25 = scalar_lea.sflag [#allocation4], %s446_s19 }
 0x39c   : > { %1275 = vrot.lane.b32.xlu1 %v3107_v7, %s2564_s23 }
 0x39e   : > { %2402 = vrot.lane.b32.xlu0 %v2336_v53, %s2564_s23  ;;  %s2470_s23 = scalar_lea.vmem %s3319_s24, 256 }
 0x39f   : > { %p2471_p10 = scmp.ne.s32.totalorder %s3319_s24, %s2470_s23  ;;  %p2478_p7 = scmp.lt.s32.totalorder %s2476_s27, %s2470_s23 }
 0x3a0   : > { %1263 = vrot.lane.b32.xlu1 %v3107_v7, %s3408_s16 }
 0x3a1   : > { %p2472_p2 = pnand %p2471_p10, %p3412_p1  ;;  %p2479_p8 = por %p2478_p7, %p2477_p4 }
 0x3a2   : > { %2407 = vrot.lane.b32.xlu0 %v2336_v53, %s3408_s16 }
 0x3a3   : > { %p2473_p3 = pneg %p2472_p2 }
 0x3a5   : > { %p2480_p11 = pnand %p2479_p8, %p2473_p3 }
 0x3a6   : > { %1435 = vperm.xlu0 %2330, %v1432_v57  }
 0x3da   : > { %v1108_v9 = vpop.permute.xlu1 %1107 }
 0x3dc   : > { %v2338_v10 = vpop.permute.xlu0 %2337 }
 0x3dd   : > { %v2340_v12 = vunpack.i.h.bf16 %v2338_v10  ;;  %v2339_v55 = vunpack.i.l.bf16 %v2338_v10 }
 0x3de   : > { %v1132_v15 = vpop.permute.xlu1 %1131 }
 0x3df   : > { %v1115_v16 = vsel %vm652_vm3, %v2340_v12, %v1108_v9  ;;  %v1113_v43 = vsel %vm652_vm3, %v2339_v55, %v2340_v12  ;;  %v1114_v17 = vsel %vm652_vm3, %v1108_v9, %v2339_v55  ;;  %vm3409_vm3 = vcmp.lt.s32.totalorder %v2830_v54, 107  ;;  %v1431_v54 = vld [vmem:[%s3364_s5] sm:$0xf] }
 0x3e0   : > { %v1118_v63 = vpack.c.bf16 %v1115_v16, %v1115_v16  ;;  %v2343_v22 = vpop.permute.xlu0 %2342  ;;  %v1117_v5 = vpack.c.bf16 %v1113_v43, %v1113_v43  ;;  %v1116_v60 = vpack.c.bf16 %v1114_v17, %v1114_v17 }
 0x3e1   : > { %v2345_v14 = vunpack.i.h.bf16 %v2343_v22  ;;  %v2344_v25 = vunpack.i.l.bf16 %v2343_v22 }
 0x3e2   : > { %v1292_v33 = vrot.slane %v1118_v63, 4  ;;  %v1120_v34 = vpop.permute.xlu1 %1119  ;;  %v1291_v29 = vrot.slane %v1117_v5, 4  ;;  %v1290_v41 = vrot.slane %v1116_v60, 4 }
 0x3e3   : > { %v1139_v45 = vsel %vm678_vm7, %v2345_v14, %v1132_v15  ;;  %v1137_v58 = vsel %vm678_vm7, %v2344_v25, %v2345_v14  ;;  %v1138_v1 = vsel %vm678_vm7, %v1132_v15, %v2344_v25 }
 0x3e4   : > { %v1142_v8 = vpack.c.bf16 %v1139_v45, %v1139_v45  ;;  %v1140_v11 = vpack.c.bf16 %v1138_v1, %v1138_v1  ;;  %v1141_v13 = vpack.c.bf16 %v1137_v58, %v1137_v58  ;;  %v2348_v18 = vpop.permute.xlu0 %2347  ;;  %v1341_v20 = vsel %vm889_vm5, %v1105_v19, %v1291_v29 }
 0x3e5   : > { %v2350_v21 = vunpack.i.h.bf16 %v2348_v18  ;;  %v2349_v23 = vunpack.i.l.bf16 %v2348_v18  ;;  %1438 = vmatprep.subr.bf16.mxu0 %v1341_v20  ;;  %v1345_v24 = vsel %vm889_vm5, %v1106_v36, %v1292_v33  ;;  %v1337_v26 = vsel %vm889_vm5, %v1104_v52, %v1290_v41 }
 0x3e6   : > { %v1298_v27 = vrot.slane %v1142_v8, 4  ;;  %2026 = vmatpush3.bf16.msra.mxu1 %v1345_v24  ;;  %v1156_v28 = vpop.permute.xlu1 %1155  ;;  %1439 = vmatpush1.bf16.msra.mxu0 %v1337_v26  ;;  %v1297_v32 = vrot.slane %v1141_v13, 4  ;;  %v1296_v40 = vrot.slane %v1140_v11, 4 }
 0x3e7   : > { %v1127_v59 = vsel %vm665_vm4, %v2350_v21, %v1120_v34  ;;  %v1125_v30 = vsel %vm665_vm4, %v2349_v23, %v2350_v21  ;;  %v1126_v31 = vsel %vm665_vm4, %v1120_v34, %v2349_v23  ;;  %2027 = vmatprep.subr.bf16.mxu1 %v2548_v0  ;;  %vm3410_vm4 = vmmov %vm3409_vm3 }
 0x3e8   : > { %v1130_v35 = vpack.c.bf16 %v1127_v59, %v1127_v59  ;;  %v2353_v37 = vpop.permute.xlu0 %2352  ;;  %v1129_v38 = vpack.c.bf16 %v1125_v30, %v1125_v30  ;;  %v1128_v39 = vpack.c.bf16 %v1126_v31, %v1126_v31 }
 0x3e9   : > { %v2355_v42 = vunpack.i.h.bf16 %v2353_v37  ;;  %v2354_v51 = vunpack.i.l.bf16 %v2353_v37 }
 0x3ea   : > { %v1144_v44 = vpop.permute.xlu1 %1143  ;;  %v1353_v46 = vsel %vm889_vm5, %v1129_v38, %v1297_v32  ;;  %v1357_v47 = vsel %vm889_vm5, %v1130_v35, %v1298_v27  ;;  %v1349_v49 = vsel %vm889_vm5, %v1128_v39, %v1296_v40 }
 0x3eb   : > { %v1163_v50 = vsel %vm704_vm6, %v2355_v42, %v1156_v28  ;;  %v1161_v48 = vsel %vm704_vm6, %v2354_v51, %v2355_v42  ;;  %v1162_v61 = vsel %vm704_vm6, %v1156_v28, %v2354_v51  ;;  %1440 = vmatprep.subr.bf16.mxu0 %v1353_v46  ;;  %2028 = vmatpush3.bf16.msra.mxu1 %v1357_v47  ;;  %vm3411_vm6 = vmmov %vm3409_vm3 }
 0x3ec   : > { %v1166_v62 = vpack.c.bf16 %v1163_v50, %v1163_v50  ;;  %v1164_v2 = vpack.c.bf16 %v1162_v61, %v1162_v61  ;;  %v1165_v3 = vpack.c.bf16 %v1161_v48, %v1161_v48  ;;  %v2358_v4 = vpop.permute.xlu0 %2357  ;;  %1441 = vmatpush1.bf16.msra.mxu0 %v1349_v49  ;;  %2029 = vmatprep.subr.bf16.mxu1 %v2548_v0 }
 0x3ed   : > { %v2360_v56 = vunpack.i.h.bf16 %v2358_v4  ;;  %v2359_v6 = vunpack.i.l.bf16 %v2358_v4 }
 0x3ee   : > { %v1304_v7 = vrot.slane %v1166_v62, 4  ;;  %v1180_v53 = vpop.permute.xlu1 %1179  ;;  %v1303_v12 = vrot.slane %v1165_v3, 4  ;;  %v1302_v17 = vrot.slane %v1164_v2, 4 }
 0x3ef   : > { %v1151_v57 = vsel %vm691_vm8, %v2360_v56, %v1144_v44  ;;  %v1149_v9 = vsel %vm691_vm8, %v2359_v6, %v2360_v56  ;;  %v1150_v10 = vsel %vm691_vm8, %v1144_v44, %v2359_v6 }
 0x3f0   : > { %v1154_v55 = vpack.c.bf16 %v1151_v57, %v1151_v57  ;;  %v2363_v15 = vpop.permute.xlu0 %2362  ;;  %v1153_v16 = vpack.c.bf16 %v1149_v9, %v1149_v9  ;;  %v1152_v43 = vpack.c.bf16 %v1150_v10, %v1150_v10 }
 0x3f1   : > { %v2365_v63 = vunpack.i.h.bf16 %v2363_v15  ;;  %v2364_v22 = vunpack.i.l.bf16 %v2363_v15 }
 0x3f2   : > { %v1168_v5 = vpop.permute.xlu1 %1167  ;;  %v1365_v60 = vsel %vm889_vm5, %v1153_v16, %v1303_v12  ;;  %v1369_v14 = vsel %vm889_vm5, %v1154_v55, %v1304_v7  ;;  %v1361_v25 = vsel %vm889_vm5, %v1152_v43, %v1302_v17 }
 0x3f3   : > { %v1187_v19 = vsel %vm730_vm9, %v2365_v63, %v1180_v53  ;;  %v1185_v33 = vsel %vm730_vm9, %v2364_v22, %v2365_v63  ;;  %v1186_v34 = vsel %vm730_vm9, %v1180_v53, %v2364_v22  ;;  %1442 = vmatprep.subr.bf16.mxu0 %v1365_v60  ;;  %2030 = vmatpush3.bf16.msra.mxu1 %v1369_v14 }
 0x3f4   : > { %v1190_v29 = vpack.c.bf16 %v1187_v19, %v1187_v19  ;;  %v1188_v36 = vpack.c.bf16 %v1186_v34, %v1186_v34  ;;  %v1189_v41 = vpack.c.bf16 %v1185_v33, %v1185_v33  ;;  %v2368_v45 = vpop.permute.xlu0 %2367  ;;  %1443 = vmatpush1.bf16.msra.mxu0 %v1361_v25  ;;  %2031 = vmatprep.subr.bf16.mxu1 %v2548_v0 }
 0x3f5   : > { %v2370_v58 = vunpack.i.h.bf16 %v2368_v45  ;;  %v2369_v1 = vunpack.i.l.bf16 %v2368_v45 }
 0x3f6   : > { %v1310_v52 = vrot.slane %v1190_v29, 4  ;;  %v1204_v8 = vpop.permute.xlu1 %1203  ;;  %v1309_v20 = vrot.slane %v1189_v41, 4  ;;  %v1308_v27 = vrot.slane %v1188_v36, 4 }
 0x3f7   : > { %v1175_v11 = vsel %vm3409_vm3, %v2370_v58, %v1168_v5  ;;  %v1173_v13 = vsel %vm3410_vm4, %v2369_v1, %v2370_v58  ;;  %v1174_v18 = vsel %vm3411_vm6, %v1168_v5, %v2369_v1 }
 0x3f8   : > { %v1178_v21 = vpack.c.bf16 %v1175_v11, %v1175_v11  ;;  %v2373_v23 = vpop.permute.xlu0 %2372  ;;  %v1177_v24 = vpack.c.bf16 %v1173_v13, %v1173_v13  ;;  %v1176_v26 = vpack.c.bf16 %v1174_v18, %v1174_v18 }
 0x3f9   : > { %v2375_v28 = vunpack.i.h.bf16 %v2373_v23  ;;  %v2374_v59 = vunpack.i.l.bf16 %v2373_v23 }
 0x3fa   : > { %v1192_v30 = vpop.permute.xlu1 %1191  ;;  %v1377_v31 = vsel %vm889_vm5, %v1177_v24, %v1309_v20  ;;  %v1381_v32 = vsel %vm889_vm5, %v1178_v21, %v1310_v52  ;;  %v1373_v35 = vsel %vm889_vm5, %v1176_v26, %v1308_v27 }
 0x3fb   : > { %v1211_v37 = vsel %vm756_vm11, %v2375_v28, %v1204_v8  ;;  %v1209_v38 = vsel %vm756_vm11, %v2374_v59, %v2375_v28  ;;  %v1210_v39 = vsel %vm756_vm11, %v1204_v8, %v2374_v59  ;;  %1444 = vmatprep.subr.bf16.mxu0 %v1377_v31  ;;  %2032 = vmatpush3.bf16.msra.mxu1 %v1381_v32 }
 0x3fc   : > { %v1214_v40 = vpack.c.bf16 %v1211_v37, %v1211_v37  ;;  %v1212_v42 = vpack.c.bf16 %v1210_v39, %v1210_v39  ;;  %v1213_v51 = vpack.c.bf16 %v1209_v38, %v1209_v38  ;;  %v2378_v44 = vpop.permute.xlu0 %2377  ;;  %1445 = vmatpush1.bf16.msra.mxu0 %v1373_v35  ;;  %2033 = vmatprep.subr.bf16.mxu1 %v2548_v0 }
 0x3fd   : > { %v2380_v46 = vunpack.i.h.bf16 %v2378_v44  ;;  %v2379_v47 = vunpack.i.l.bf16 %v2378_v44 }
 0x3fe   : > { %v1316_v49 = vrot.slane %v1214_v40, 4  ;;  %v1228_v50 = vpop.permute.xlu1 %1227  ;;  %v1315_v2 = vrot.slane %v1213_v51, 4  ;;  %v1314_v7 = vrot.slane %v1212_v42, 4 }
 0x3ff   : > { %v1199_v48 = vsel %vm743_vm12, %v2380_v46, %v1192_v30  ;;  %v1197_v61 = vsel %vm743_vm12, %v2379_v47, %v2380_v46  ;;  %v1198_v62 = vsel %vm743_vm12, %v1192_v30, %v2379_v47 }
 0x400   : > { %v1202_v3 = vpack.c.bf16 %v1199_v48, %v1199_v48  ;;  %v2383_v4 = vpop.permute.xlu0 %2382  ;;  %v1201_v56 = vpack.c.bf16 %v1197_v61, %v1197_v61  ;;  %v1200_v6 = vpack.c.bf16 %v1198_v62, %v1198_v62 }
 0x401   : > { %v2385_v53 = vunpack.i.h.bf16 %v2383_v4  ;;  %v2384_v57 = vunpack.i.l.bf16 %v2383_v4 }
 0x402   : > { %v1216_v9 = vpop.permute.xlu1 %1215  ;;  %v1389_v10 = vsel %vm889_vm5, %v1201_v56, %v1315_v2  ;;  %v1393_v12 = vsel %vm889_vm5, %v1202_v3, %v1316_v49  ;;  %v1385_v55 = vsel %vm889_vm5, %v1200_v6, %v1314_v7 }
 0x403   : > { %v1235_v15 = vsel %vm782_vm13, %v2385_v53, %v1228_v50  ;;  %v1233_v16 = vsel %vm782_vm13, %v2384_v57, %v2385_v53  ;;  %v1234_v43 = vsel %vm782_vm13, %v1228_v50, %v2384_v57  ;;  %1446 = vmatprep.subr.bf16.mxu0 %v1389_v10  ;;  %2034 = vmatpush3.bf16.msra.mxu1 %v1393_v12 }
 0x404   : > { %v1238_v17 = vpack.c.bf16 %v1235_v15, %v1235_v15  ;;  %v1236_v63 = vpack.c.bf16 %v1234_v43, %v1234_v43  ;;  %v1237_v22 = vpack.c.bf16 %v1233_v16, %v1233_v16  ;;  %v2388_v5 = vpop.permute.xlu0 %2387  ;;  %1447 = vmatpush1.bf16.msra.mxu0 %v1385_v55  ;;  %2035 = vmatprep.subr.bf16.mxu1 %v2548_v0  ;;  %v1520_v15 = vld [vmem:[#allocation5 + $0x8] sm:$0xff]  ;;  %v1522_v16 = vld [vmem:[#allocation5 + $0x18] sm:$0xff] }
 0x405   : > { %v2390_v60 = vunpack.i.h.bf16 %v2388_v5  ;;  %v2389_v14 = vunpack.i.l.bf16 %v2388_v5 }
 0x406   : > { %v1322_v25 = vrot.slane %v1238_v17, 4  ;;  %v1252_v19 = vpop.permute.xlu1 %1251  ;;  %v1321_v36 = vrot.slane %v1237_v22, 4  ;;  %v1320_v52 = vrot.slane %v1236_v63, 4 }
 0x407   : > { %v1223_v33 = vsel %vm769_vm14, %v2390_v60, %v1216_v9  ;;  %v1221_v34 = vsel %vm769_vm14, %v2389_v14, %v2390_v60  ;;  %v1222_v29 = vsel %vm769_vm14, %v1216_v9, %v2389_v14 }
 0x408   : > { %v1226_v41 = vpack.c.bf16 %v1223_v33, %v1223_v33  ;;  %v2393_v45 = vpop.permute.xlu0 %2392  ;;  %v1225_v58 = vpack.c.bf16 %v1221_v34, %v1221_v34  ;;  %v1224_v1 = vpack.c.bf16 %v1222_v29, %v1222_v29  ;;  %v1519_v33 = vld [vmem:[#allocation5] sm:$0xff]  ;;  %v1521_v34 = vld [vmem:[#allocation5 + $0x10] sm:$0xff] }
 0x409   : > { %v2395_v8 = vunpack.i.h.bf16 %v2393_v45  ;;  %v2394_v11 = vunpack.i.l.bf16 %v2393_v45  ;;  %v1524_v45 = vld [vmem:[#allocation5 + $0x28] sm:$0xff] }
 0x40a   : > { %v1240_v13 = vpop.permute.xlu1 %1239  ;;  %v1401_v18 = vsel %vm889_vm5, %v1225_v58, %v1321_v36  ;;  %v1405_v20 = vsel %vm889_vm5, %v1226_v41, %v1322_v25  ;;  %v1397_v21 = vsel %vm889_vm5, %v1224_v1, %v1320_v52  ;;  %v1526_v58 = vld [vmem:[#allocation5 + $0x38] sm:$0xff]  ;;  %v2075_v1 = vpack.c.bf16 %v1521_v34, %v1519_v33  ;;  %v1559_v34 = vld [vmem:[#allocation5 + $0x140] sm:$0xff] }
 0x40b   : > { %v1259_v23 = vsel %vm808_vm15, %v2395_v8, %v1252_v19  ;;  %v1257_v24 = vsel %vm808_vm15, %v2394_v11, %v2395_v8  ;;  %v1258_v26 = vsel %vm808_vm15, %v1252_v19, %v2394_v11  ;;  %1448 = vmatprep.subr.bf16.mxu0 %v1401_v18  ;;  %2036 = vmatpush3.bf16.msra.mxu1 %v1405_v20  ;;  %v1523_v8 = vld [vmem:[#allocation5 + $0x20] sm:$0xff]  ;;  %v1525_v11 = vld [vmem:[#allocation5 + $0x30] sm:$0xff]  ;;  %v1530_v18 = vld [vmem:[#allocation5 + $0x58] sm:$0xff] }
 0x40c   : > { %v1262_v27 = vpack.c.bf16 %v1259_v23, %v1259_v23  ;;  %v1260_v28 = vpack.c.bf16 %v1258_v26, %v1258_v26  ;;  %v1261_v59 = vpack.c.bf16 %v1257_v24, %v1257_v24  ;;  %v2398_v30 = vpop.permute.xlu0 %2397  ;;  %1449 = vmatpush1.bf16.msra.mxu0 %v1397_v21  ;;  %2037 = vmatprep.subr.bf16.mxu1 %v2548_v0  ;;  %v1527_v23 = vld [vmem:[#allocation5 + $0x40] sm:$0xff]  ;;  %v1529_v24 = vld [vmem:[#allocation5 + $0x50] sm:$0xff]  ;;  %v1532_v26 = vld [vmem:[#allocation5 + $0x68] sm:$0xff] }
 0x40d   : > { %v2400_v31 = vunpack.i.h.bf16 %v2398_v30  ;;  %v2399_v32 = vunpack.i.l.bf16 %v2398_v30  ;;  %v2073_v19 = vpack.c.bf16 %v1522_v16, %v1520_v15  ;;  %v2077_v52 = vpack.c.bf16 %v1526_v58, %v1524_v45  ;;  %v1531_v30 = vld [vmem:[#allocation5 + $0x60] sm:$0xff]  ;;  %v1553_v16 = vld [vmem:[#allocation5 + $0x110] sm:$0xff] }
 0x40e   : > { %v1328_v35 = vrot.slane %v1262_v27, 4  ;;  %v1327_v40 = vrot.slane %v1261_v59, 4  ;;  %v1276_v51 = vpop.permute.xlu1 %1275  ;;  %v1326_v49 = vrot.slane %v1260_v28, 4  ;;  %v2079_v20 = vpack.c.bf16 %v1525_v11, %v1523_v8  ;;  %v1534_v27 = vld [vmem:[#allocation5 + $0x78] sm:$0xff]  ;;  %v1551_v15 = vld [vmem:[#allocation5 + $0x100] sm:$0xff] }
 0x40f   : > { %v1247_v37 = vsel %vm795_vm0, %v2400_v31, %v1240_v13  ;;  %v1245_v38 = vsel %vm795_vm0, %v2399_v32, %v2400_v31  ;;  %v1246_v39 = vsel %vm795_vm0, %v1240_v13, %v2399_v32  ;;  %v1528_v13 = vld [vmem:[#allocation5 + $0x48] sm:$0xff]  ;;  %v2083_v28 = vpack.c.bf16 %v1529_v24, %v1527_v23  ;;  %v1533_v31 = vld [vmem:[#allocation5 + $0x70] sm:$0xff]  ;;  %v1570_v8 = vld [vmem:[#allocation5 + $0x198] sm:$0xff] }
 0x410   : > { %v1250_v42 = vpack.c.bf16 %v1247_v37, %v1247_v37  ;;  %v2403_v44 = vpop.permute.xlu0 %2402  ;;  %v1249_v46 = vpack.c.bf16 %v1245_v38, %v1245_v38  ;;  %v1248_v47 = vpack.c.bf16 %v1246_v39, %v1246_v39  ;;  %v2081_v21 = vpack.c.bf16 %v1530_v18, %v1528_v13  ;;  %v1536_v32 = vld [vmem:[#allocation5 + $0x88] sm:$0xff]  ;;  %v1535_v39 = vld [vmem:[#allocation5 + $0x80] sm:$0xff]  ;;  %v1574_v23 = vld [vmem:[#allocation5 + $0x1b8] sm:$0xff] }
 0x411   : > { %v2405_v50 = vunpack.i.h.bf16 %v2403_v44  ;;  %v2404_v48 = vunpack.i.l.bf16 %v2403_v44  ;;  %v2085_v59 = vpack.c.bf16 %v1534_v27, %v1532_v26  ;;  %v2087_v37 = vpack.c.bf16 %v1533_v31, %v1531_v30  ;;  %v1567_v18 = vld [vmem:[#allocation5 + $0x180] sm:$0xff]  ;;  %v1578_v30 = vld [vmem:[#allocation5 + $0x1d8] sm:$0xff] }
 0x412   : > { %v1413_v61 = vsel %vm889_vm5, %v1249_v46, %v1327_v40  ;;  %v1417_v62 = vsel %vm889_vm5, %v1250_v42, %v1328_v35  ;;  %v1409_v2 = vsel %vm889_vm5, %v1248_v47, %v1326_v49  ;;  %v1264_v55 = vpop.permute.xlu1 %1263  ;;  %v1538_v35 = vld [vmem:[#allocation5 + $0x98] sm:$0xff]  ;;  %v1537_v40 = vld [vmem:[#allocation5 + $0x90] sm:$0xff]  ;;  %v1540_v42 = vld [vmem:[#allocation5 + $0xa8] sm:$0xff] }
 0x413   : > { %v1283_v3 = vsel %vm834_vm1, %v2405_v50, %v1276_v51  ;;  %v1281_v4 = vsel %vm834_vm1, %v2404_v48, %v2405_v50  ;;  %v1282_v56 = vsel %vm834_vm1, %v1276_v51, %v2404_v48  ;;  %1450 = vmatprep.subr.bf16.mxu0 %v1413_v61  ;;  %2038 = vmatpush3.bf16.msra.mxu1 %v1417_v62  ;;  %v1542_v51 = vld [vmem:[#allocation5 + $0xb8] sm:$0xff]  ;;  %v1539_v47 = vld [vmem:[#allocation5 + $0xa0] sm:$0xff]  ;;  %v1541_v49 = vld [vmem:[#allocation5 + $0xb0] sm:$0xff] }
 0x414   : > { %v1286_v6 = vpack.c.bf16 %v1283_v3, %v1283_v3  ;;  %v1284_v7 = vpack.c.bf16 %v1282_v56, %v1282_v56  ;;  %v1285_v53 = vpack.c.bf16 %v1281_v4, %v1281_v4  ;;  %v2408_v57 = vpop.permute.xlu0 %2407  ;;  %1451 = vmatpush1.bf16.msra.mxu0 %v1409_v2  ;;  %2039 = vmatprep.subr.bf16.mxu1 %v2548_v0  ;;  %v1544_v50 = vld [vmem:[#allocation5 + $0xc8] sm:$0xff]  ;;  %v1546_v48 = vld [vmem:[#allocation5 + $0xd8] sm:$0xff]  ;;  %v1543_v2 = vld [vmem:[#allocation5 + $0xc0] sm:$0xff] }
 0x415   : > { %v2410_v9 = vunpack.i.h.bf16 %v2408_v57  ;;  %v2409_v10 = vunpack.i.l.bf16 %v2408_v57  ;;  %v2089_v38 = vpack.c.bf16 %v1538_v35, %v1536_v32  ;;  %v2091_v44 = vpack.c.bf16 %v1537_v40, %v1535_v39  ;;  %v1545_v3 = vld [vmem:[#allocation5 + $0xd0] sm:$0xff]  ;;  %v1548_v4 = vld [vmem:[#allocation5 + $0xe8] sm:$0xff]  ;;  %v1550_v56 = vld [vmem:[#allocation5 + $0xf8] sm:$0xff] }
 0x416   : > { %v1334_v12 = vrot.slane %v1286_v6, 4  ;;  %v1333_v22 = vrot.slane %v1285_v53, 4  ;;  %v1332_v25 = vrot.slane %v1284_v7, 4  ;;  %v2093_v46 = vpack.c.bf16 %v1542_v51, %v1540_v42  ;;  %v1547_v53 = vld [vmem:[#allocation5 + $0xe0] sm:$0xff]  ;;  %v1549_v57 = vld [vmem:[#allocation5 + $0xf0] sm:$0xff]  ;;  %v1580_v39 = vld [vmem:[#allocation5 + $0x1e8] sm:$0xff] }
 0x417   : > { %v1271_v43 = vsel %vm821_vm10, %v2410_v9, %v1264_v55  ;;  %v1269_v17 = vsel %vm821_vm10, %v2409_v10, %v2410_v9  ;;  %v1270_v63 = vsel %vm821_vm10, %v1264_v55, %v2409_v10  ;;  %v2095_v61 = vpack.c.bf16 %v1541_v49, %v1539_v47  ;;  %v1552_v9 = vld [vmem:[#allocation5 + $0x108] sm:$0xff]  ;;  %v1554_v10 = vld [vmem:[#allocation5 + $0x118] sm:$0xff]  ;;  %v1571_v27 = vld [vmem:[#allocation5 + $0x1a0] sm:$0xff] }
 0x418   : > { %v1274_v5 = vpack.c.bf16 %v1271_v43, %v1271_v43  ;;  %v1273_v60 = vpack.c.bf16 %v1269_v17, %v1269_v17  ;;  %v1272_v14 = vpack.c.bf16 %v1270_v63, %v1270_v63  ;;  %v2097_v62 = vpack.c.bf16 %v1546_v48, %v1544_v50  ;;  %v1556_v43 = vld [vmem:[#allocation5 + $0x128] sm:$0xff]  ;;  %v1558_v17 = vld [vmem:[#allocation5 + $0x138] sm:$0xff]  ;;  %v1575_v35 = vld [vmem:[#allocation5 + $0x1c0] sm:$0xff] }
 0x419   : > { %v2099_v6 = vpack.c.bf16 %v1545_v3, %v1543_v2  ;;  %v2101_v7 = vpack.c.bf16 %v1550_v56, %v1548_v4  ;;  %v2105_v55 = vpack.c.bf16 %v1554_v10, %v1552_v9  ;;  %v2107_v63 = vpack.c.bf16 %v1553_v16, %v1551_v15  ;;  %v1582_v40 = vld [vmem:[#allocation5 + $0x1f8] sm:$0xff]  ;;  %v1579_v51 = vld [vmem:[#allocation5 + $0x1e0] sm:$0xff]  ;;  %v1584_v47 = vld [vmem:[#allocation5 + $0x208] sm:$0xff] }
 0x41a   : > { %v1425_v29 = vsel %vm889_vm5, %v1273_v60, %v1333_v22  ;;  %v1429_v36 = vsel %vm889_vm5, %v1274_v5, %v1334_v12  ;;  %v1421_v41 = vsel %vm889_vm5, %v1272_v14, %v1332_v25  ;;  %v2103_v12 = vpack.c.bf16 %v1549_v57, %v1547_v53  ;;  %v1555_v5 = vld [vmem:[#allocation5 + $0x120] sm:$0xff]  ;;  %v1557_v60 = vld [vmem:[#allocation5 + $0x130] sm:$0xff]  ;;  %v1560_v14 = vld [vmem:[#allocation5 + $0x148] sm:$0xff] }
 0x41b   : > { %1452 = vmatprep.subr.bf16.mxu0 %v1425_v29  ;;  %2040 = vmatpush3.bf16.msra.mxu1 %v1429_v36  ;;  %v2109_v22 = vpack.c.bf16 %v1558_v17, %v1556_v43  ;;  %v1562_v25 = vld [vmem:[#allocation5 + $0x158] sm:$0xff]  ;;  %v1561_v29 = vld [vmem:[#allocation5 + $0x150] sm:$0xff]  ;;  %v1564_v36 = vld [vmem:[#allocation5 + $0x168] sm:$0xff]  ;;  %v2133_v42 = vpack.c.bf16 %v1582_v40, %v1580_v39  ;;  %vm1761_vm5 = vcmask 7168  }
 0x41c   : > { %1453 = vmatpush1.bf16.msra.mxu0 %v1421_v41  ;;  %v2113_v33 = vpack.c.bf16 %v1562_v25, %v1560_v14  ;;  %v1566_v41 = vld [vmem:[#allocation5 + $0x178] sm:$0xff]  ;;  %v2115_v45 = vpack.c.bf16 %v1561_v29, %v1559_v34  ;;  %v1585_v2 = vld [vmem:[#allocation5 + $0x210] sm:$0xff]  ;;  %v1588_v4 = vld [vmem:[#allocation5 + $0x228] sm:$0xff] }
 0x41d   : > { %2074 = vmatprep.subr.bf16.mxu0 %v2073_v19  ;;  %v2111_v19 = vpack.c.bf16 %v1557_v60, %v1555_v5  ;;  %v2117_v58 = vpack.c.bf16 %v1566_v41, %v1564_v36  ;;  %v1586_v49 = vld [vmem:[#allocation5 + $0x218] sm:$0xff]  ;;  %v1587_v43 = vld [vmem:[#allocation5 + $0x220] sm:$0xff]  ;;  %v1589_v17 = vld [vmem:[#allocation5 + $0x230] sm:$0xff] }
 0x41e   : > { %2042 = vmatmul.mubr.bf16.vlgmr.msra.gmra.mrb[12].mxu1 %v1431_v54  ;;  %v2137_v50 = vpack.c.bf16 %v1586_v49, %v1584_v47  ;;  %v1590_v56 = vld [vmem:[#allocation5 + $0x238] sm:$0xff]  ;;  %v2143_v5 = vpack.c.bf16 %v1589_v17, %v1587_v43  ;;  %v1591_v14 = vld [vmem:[#allocation5 + $0x240] sm:$0xff]  ;;  %v1593_v25 = vld [vmem:[#allocation5 + $0x250] sm:$0xff] }
 0x41f   : > { %1471 = vmatmul.mubr.bf16.vlgmr.msra.gmra.mrb[0].mxu0 %v1431_v54  ;;  %v1563_v54 = vld [vmem:[#allocation5 + $0x160] sm:$0xff]  ;;  %v2141_v16 = vpack.c.bf16 %v1590_v56, %v1588_v4  ;;  %v2147_v34 = vpack.c.bf16 %v1593_v25, %v1591_v14  ;;  %v1597_v41 = vld [vmem:[#allocation5 + $0x270] sm:$0xff] }
 0x420   : > { %2076 = vmatpush1.bf16.msra.mxu0 %v2075_v1  ;;  %v1565_v1 = vld [vmem:[#allocation5 + $0x170] sm:$0xff]  ;;  %v1595_v36 = vld [vmem:[#allocation5 + $0x260] sm:$0xff] }
 0x421   : > { %2078 = vmatprep.subr.bf16.mxu0 %v2077_v52  ;;  %v1568_v52 = vld [vmem:[#allocation5 + $0x188] sm:$0xff]  ;;  %v2119_v11 = vpack.c.bf16 %v1565_v1, %v1563_v54  ;;  %v2151_v54 = vpack.c.bf16 %v1597_v41, %v1595_v36 }
 0x422   : > { %v2121_v13 = vpack.c.bf16 %v1570_v8, %v1568_v52  ;;  %v1599_v52 = vld [vmem:[#allocation5 + $0x280] sm:$0xff]  ;;  %v1604_v8 = vld [vmem:[#allocation5 + $0x2a8] sm:$0xff] }
 0x424   : > { %2080 = vmatpush1.bf16.msra.mxu0 %v2079_v20  ;;  %v1569_v20 = vld [vmem:[#allocation5 + $0x190] sm:$0xff] }
 0x425   : > { %2082 = vmatprep.subr.bf16.mxu0 %v2081_v21  ;;  %v1572_v21 = vld [vmem:[#allocation5 + $0x1a8] sm:$0xff]  ;;  %v2123_v24 = vpack.c.bf16 %v1569_v20, %v1567_v18  ;;  %v3289_v48 = vpop.permute.xlu0 %1435  ;;  %v1603_v20 = vld [vmem:[#allocation5 + $0x2a0] sm:$0xff] }
 0x426   : > { %v2125_v26 = vpack.c.bf16 %v1574_v23, %v1572_v21  ;;  %v1605_v21 = vld [vmem:[#allocation5 + $0x2b0] sm:$0xff]  ;;  %v1608_v23 = vld [vmem:[#allocation5 + $0x2c8] sm:$0xff] }
 0x428   : > { %2084 = vmatpush1.bf16.msra.mxu0 %v2083_v28  ;;  %v1573_v28 = vld [vmem:[#allocation5 + $0x1b0] sm:$0xff] }
 0x429   : > { %2086 = vmatprep.subr.bf16.mxu0 %v2085_v59  ;;  %v1576_v59 = vld [vmem:[#allocation5 + $0x1c8] sm:$0xff]  ;;  %v2127_v31 = vpack.c.bf16 %v1573_v28, %v1571_v27  ;;  %v1607_v28 = vld [vmem:[#allocation5 + $0x2c0] sm:$0xff] }
 0x42a   : > { %v2129_v32 = vpack.c.bf16 %v1578_v30, %v1576_v59  ;;  %v1609_v59 = vld [vmem:[#allocation5 + $0x2d0] sm:$0xff]  ;;  %v1612_v30 = vld [vmem:[#allocation5 + $0x2e8] sm:$0xff] }
 0x42c   : > { %2088 = vmatpush1.bf16.msra.mxu0 %v2087_v37  ;;  %v1577_v37 = vld [vmem:[#allocation5 + $0x1d0] sm:$0xff] }
 0x42d   : > { %2090 = vmatprep.subr.bf16.mxu0 %v2089_v38  ;;  %v2131_v38 = vpack.c.bf16 %v1577_v37, %v1575_v35  ;;  %v1611_v37 = vld [vmem:[#allocation5 + $0x2e0] sm:$0xff] }
 0x430   : > { %2092 = vmatpush1.bf16.msra.mxu0 %v2091_v44  ;;  %v1581_v44 = vld [vmem:[#allocation5 + $0x1f0] sm:$0xff] }
 0x431   : > { %2094 = vmatprep.subr.bf16.mxu0 %v2093_v46  ;;  %v2135_v46 = vpack.c.bf16 %v1581_v44, %v1579_v51 }
 0x434   : > { %2096 = vmatpush1.bf16.msra.mxu0 %v2095_v61 }
 0x435   : > { %2098 = vmatprep.subr.bf16.mxu0 %v2097_v62  ;;  %v1583_v62 = vld [vmem:[#allocation5 + $0x200] sm:$0xff] }
 0x436   : > { %v2139_v10 = vpack.c.bf16 %v1585_v2, %v1583_v62 }
 0x438   : > { %2100 = vmatpush1.bf16.msra.mxu0 %v2099_v6 }
 0x439   : > { %2102 = vmatprep.subr.bf16.mxu0 %v2101_v7 }
 0x43c   : > { %2104 = vmatpush1.bf16.msra.mxu0 %v2103_v12 }
 0x43d   : > { %2106 = vmatprep.subr.bf16.mxu0 %v2105_v55 }
 0x440   : > { %2108 = vmatpush1.bf16.msra.mxu0 %v2107_v63  ;;  %v1592_v63 = vld [vmem:[#allocation5 + $0x248] sm:$0xff] }
 0x441   : > { %2110 = vmatprep.subr.bf16.mxu0 %v2109_v22  ;;  %v1594_v22 = vld [vmem:[#allocation5 + $0x258] sm:$0xff] }
 0x442   : > { %v2145_v60 = vpack.c.bf16 %v1594_v22, %v1592_v63 }
 0x444   : > { %2112 = vmatpush1.bf16.msra.mxu0 %v2111_v19  ;;  %v1596_v19 = vld [vmem:[#allocation5 + $0x268] sm:$0xff] }
 0x445   : > { %2114 = vmatprep.subr.bf16.mxu0 %v2113_v33  ;;  %v1598_v33 = vld [vmem:[#allocation5 + $0x278] sm:$0xff] }
 0x446   : > { %v2149_v29 = vpack.c.bf16 %v1598_v33, %v1596_v19 }
 0x448   : > { %2116 = vmatpush1.bf16.msra.mxu0 %v2115_v45  ;;  %v1600_v45 = vld [vmem:[#allocation5 + $0x288] sm:$0xff] }
 0x449   : > { %2118 = vmatprep.subr.bf16.mxu0 %v2117_v58  ;;  %v1602_v58 = vld [vmem:[#allocation5 + $0x298] sm:$0xff] }
 0x44a   : > { %v2153_v1 = vpack.c.bf16 %v1602_v58, %v1600_v45 }
 0x44c   : > { %2120 = vmatpush1.bf16.msra.mxu0 %v2119_v11  ;;  %v1606_v11 = vld [vmem:[#allocation5 + $0x2b8] sm:$0xff] }
 0x44d   : > { %2122 = vmatprep.subr.bf16.mxu0 %v2121_v13  ;;  %v2157_v18 = vpack.c.bf16 %v1606_v11, %v1604_v8 }
 0x450   : > { %2124 = vmatpush1.bf16.msra.mxu0 %v2123_v24  ;;  %v1610_v24 = vld [vmem:[#allocation5 + $0x2d8] sm:$0xff] }
 0x451   : > { %2126 = vmatprep.subr.bf16.mxu0 %v2125_v26  ;;  %v2159_v26 = vpack.c.bf16 %v1605_v21, %v1603_v20  ;;  %v2161_v27 = vpack.c.bf16 %v1610_v24, %v1608_v23 }
 0x454   : > { %2128 = vmatpush1.bf16.msra.mxu0 %v2127_v31  ;;  %v1614_v31 = vld [vmem:[#allocation5 + $0x2f8] sm:$0xff] }
 0x455   : > { %2130 = vmatprep.subr.bf16.mxu0 %v2129_v32  ;;  %v2163_v32 = vpack.c.bf16 %v1609_v59, %v1607_v28  ;;  %v2165_v35 = vpack.c.bf16 %v1614_v31, %v1612_v30 }
 0x458   : > { %2132 = vmatpush1.bf16.msra.mxu0 %v2131_v38  ;;  %v1613_v38 = vld [vmem:[#allocation5 + $0x2f0] sm:$0xff] }
 0x459   : > { %2134 = vmatprep.subr.bf16.mxu0 %v2133_v42  ;;  %v2167_v39 = vpack.c.bf16 %v1613_v38, %v1611_v37 }
 0x45c   : > { %2136 = vmatpush1.bf16.msra.mxu0 %v2135_v46 }
 0x45d   : > { %2138 = vmatprep.subr.bf16.mxu0 %v2137_v50 }
 0x4f1   : > { %v3291_v61 = vpop.f32.mrb[12].mxu1 }
 0x4f2   : > { %v1472_v3 = vpop.f32.mrb[0].mxu0  ;;  %v2043_v6 = vpop.f32.mrb[13].mxu1  ;;  %v1514_v40 = vadd.f32 %v3291_v61, %v3289_v48  ;;  %v1782_v61 = vld [vmem:[%s3368_s9] sm:$0xff] }
 0x4f3   : > { %v1474_v7 = vpop.f32.mrb[1].mxu0  ;;  %v1516_v53 = vpop.f32.mrb[14].mxu1  ;;  %v1473_v55 = vadd.f32 %v1472_v3, %v3289_v48  ;;  %v1790_v3 = vld [vmem:[%s462_s28] sm:$0xff] }
 0x4f4   : > { %v1475_v57 = vadd.f32 %v1474_v7, %v3289_v48  ;;  %v1476_v9 = vpop.f32.mrb[2].mxu0  ;;  %v2044_v12 = vpop.f32.mrb[15].mxu1  ;;  %v1773_v7 = vld [vmem:[%s3367_s8] sm:$0xff] }
 0x4f5   : > { %v1477_v15 = vpop.f32.mrb[3].mxu0 }
 0x4f6   : > { %1679 = vmatprep.mubr.f32.mxu0 %v1475_v57 }
 0x4f7   : > { %1680 = vmatmul.mubr.f32.vlgmr.msra.gmra.mrb[4].mxu0 %v1473_v55 }
 0x4f8   : > { %2140 = vmatpush1.bf16.msra.mxu0 %v2139_v10  ;;  %1750 = vmatprep.mubr.f32.mxu0 %v2548_v0  ;;  %v1601_v0 = vld [vmem:[#allocation5 + $0x290] sm:$0xff] }
 0x4f9   : > { %2142 = vmatprep.subr.bf16.mxu0 %v2141_v16  ;;  %v2155_v13 = vpack.c.bf16 %v1601_v0, %v1599_v52 }
 0x4fc   : > { %2144 = vmatpush1.bf16.msra.mxu0 %v2143_v5 }
 0x4fd   : > { %2146 = vmatprep.subr.bf16.mxu0 %v2145_v60 }
 0x500   : > { %2148 = vmatpush1.bf16.msra.mxu0 %v2147_v34 }
 0x501   : > { %2150 = vmatprep.subr.bf16.mxu0 %v2149_v29 }
 0x504   : > { %2152 = vmatpush1.bf16.msra.mxu0 %v2151_v54 }
 0x505   : > { %2154 = vmatprep.subr.bf16.mxu0 %v2153_v1 }
 0x508   : > { %2156 = vmatpush1.bf16.msra.mxu0 %v2155_v13 }
 0x509   : > { %2158 = vmatprep.subr.bf16.mxu0 %v2157_v18 }
 0x50c   : > { %2160 = vmatpush1.bf16.msra.mxu0 %v2159_v26 }
 0x50d   : > { %2162 = vmatprep.subr.bf16.mxu0 %v2161_v27 }
 0x510   : > { %2164 = vmatpush1.bf16.msra.mxu0 %v2163_v32 }
 0x511   : > { %2166 = vmatprep.subr.bf16.mxu0 %v2165_v35 }
 0x514   : > { %2168 = vmatpush1.bf16.msra.mxu0 %v2167_v39 }
 0x517   : > { %1751 = vmatmul.mubr.f32.vlgmr.msra.gmra.mrb[4].mxu0 %v1514_v40 }
 0x5ea   : > { %v1752_v42 = vpop.f32.mrb[4].mxu0 }
 0x5eb   : > { %v1754_v51 = vpop.f32.mrb[5].mxu0 }
 0x5ec   : > { %v1757_v44 = vadd.f32 %v1754_v51, %v1752_v42 }
 0x5ee   : > { %1758 = vadd.xlane.f32.xlu1 %v1757_v44 }
 0x5ff   : > { %1785 = vperm.xlu1 %2411, %v1782_v61  }
 0x603   : > { %1793 = vperm.xlu1 %2411, %v1790_v3  }
 0x67b   : > { %v1759_v46 = vpop.xlane.xlu1 %1758 }
 0x67c   : > { %v1760_v47 = vmul.f32 0.00390625, %v1759_v46 }
 0x67e   : > { %1762 = vst.msk [vmem:[%s466_s26] sm:$0xff] %vm1761_vm5, %v1760_v47  ;;  %v1763_v49 = vsub.f32 %v1752_v42, %v1760_v47  ;;  %v1764_v50 = vsub.f32 %v1754_v51, %v1760_v47  ;;  %s3317_s26 = scalar_lea.hbm %s3370_s11, %s1958_s18 }
 0x67f   : > { %v1786_v9 = vpop.permute.xlu1 %1785 }
 0x680   : > { %v1765_v62 = vmul.f32 %v1763_v49, %v1763_v49  ;;  %v1766_v2 = vmul.f32 %v1764_v50, %v1764_v50 }
 0x682   : > { %v1767_v48 = vadd.f32 %v1766_v2, %v1765_v62 }
 0x683   : > { %v1794_v43 = vpop.permute.xlu1 %1793 }
 0x684   : > { %1768 = vadd.xlane.f32.xlu0 %v1767_v48 }
 0x711   : > { %v1769_v4 = vpop.xlane.xlu0 %1768 }
 0x712   : > { %v1770_v56 = vmul.f32 0.00390625, %v1769_v4 }
 0x714   : > { %v1771_v6 = vadd.f32 1e-05, %v1770_v56 }
 0x716   : > { %2412 = vrsqrt.f32 %v1771_v6 }
 0x720   : > { %v2413_v53 = vpop.eup %2412 }
 0x721   : > { %v1774_v57 = vmul.f32 %v2413_v53, %v1773_v7 }
 0x723   : > { %1777 = vperm.xlu0 %2330, %v1774_v57  }
 0x7a2   : > { %v1778_v10 = vpop.permute.xlu0 %1777 }
 0x7a3   : > { %v1780_v12 = vmul.f32 %v1778_v10, %v1763_v49  ;;  %v1781_v55 = vmul.f32 %v1778_v10, %v1764_v50 }
 0x7a5   : > { %v1788_v15 = vadd.f32 %v1786_v9, %v1780_v12  ;;  %v1789_v16 = vadd.f32 %v1786_v9, %v1781_v55 }
 0x7a7   : > { %v1796_v17 = vadd.f32 %v1794_v43, %v1788_v15  ;;  %v1797_v63 = vadd.f32 %v1794_v43, %v1789_v16 }
 0x7a9   : > { %1798 = vst [vmem:[%s448_s21] sm:$0xff] %v1796_v17  ;;  %1799 = vst [vmem:[%s448_s21 + $0x8] sm:$0xff] %v1797_v63 }
 0x7aa   : > { %2483 = shalt.err (!%p2480_p11)
}
 0x7ab   : > { %s2484_s28 = scalar_lea.hbm %s3317_s26, 256  ;;  %s2488_s19 = scalar_lea.hbm %s3370_s11, 512 }
 0x7ac   : > { %p2485_p13 = scmp.ne.s32.totalorder %s3317_s26, %s2484_s28  ;;  %p2489_p6 = scmp.lt.u32.totalorder %s3317_s26, %s3370_s11 }
 0x7ad   : > { %p2490_p9 = scmp.lt.u32.totalorder %s2488_s19, %s2484_s28  ;;  %p2492_p10 = scmp.lt.u32.totalorder %s2484_s28, %s3317_s26 }
 0x7ae   : > { %p2486_p0 = pnand %p2485_p13, %p3412_p1 }
 0x7af   : > { %p2491_p12 = por %p2490_p9, %p2489_p6 }
 0x7b0   : > { %p2487_p5 = pneg %p2486_p0 }
 0x7b1   : > { %p2493_p2 = por %p2492_p10, %p2491_p12 }
 0x7b3   : > { %p2494_p3 = pnand %p2493_p2, %p2487_p5 }
 0x7b5   : > { %2497 = shalt.err (!%p2494_p3)
}
 0x7b6   : > { %2179 = dma.vmem_to_hbm [thread:$0]  (%p3412_p1), %s3319_s24, 256, %s3317_s26, %s1801_s25  }
 0x7b7 PF: > { %s3413_s21 = sld [smem:[#allocation13_spill]]  ;;  %s3414_s15 = sld [smem:[#allocation11_spill]] }
 0x7b8   : > { %s3415_s20 = sld [smem:[#allocation16_spill]] }
 0x7bd   : > { %p2196_p4 = scmp.ge.s32.totalorder %s3413_s21, 2  ;;  %s1834_s23 = sand.u32 1, %s3414_s15  }
 0x7be   : > { %p3416_p7 = scmp.ne.s32.totalorder %s3415_s20, 0  ;;  %s1835_s14 = scalar_lea.sflag [#allocation4], %s1834_s23 }
 0x7c0   : > { %p2189_p8 = pnand %p2196_p4, %p3416_p7 }
 0x7c2   : > { %2523 = dma.done.wait (!%p2189_p8), %s1835_s14, 256  }
 0x7c3   : > { %2525 = vsyncadd (!%p2189_p8), %s1835_s14, 4294967040  ;;  %s3417_s24 = sld [smem:[#allocation14_spill]]  ;;  %s3418_s30 = sld [smem:[#allocation12_spill]] }
 0x7c4   : > { %s3419_s23 = sld [smem:[#allocation15_spill]]  ;;  %s3420_s21 = smov %s2532_s22 }
 0x7c9   : > { %p25_p11 = scmp.ge.s32.totalorder %s3417_s24, 4   ;;  %s3421_s22 = smov %s3418_s30 }
 0x7cb   :  { %27 = sbr.rel (!%p25_p11) target bundleno = 5 (0x5), region = 123 }
 0x7d2   :  { %1847 = vsyncpa [#allocation3], 1 }
 0x7d3   :  { %1849 = vsyncpa [#allocation3 + $0x1], 1 }
 0x7d4   :  { %1850 = vsyncpa [#allocation6], 1 }
 0x7d5   :  { %1851 = vsyncpa [#allocation4], 1 }
 0x7d6   :  { %1853 = vsyncpa [#allocation4 + $0x1], 1 }

</bundles_post_ra>
